<compile_context>
chip_gen: v6e
topology: v6e:2x2x1
jax: 0.10.0
libtpu: 0.0.40
codegen_flags: <defaults>
</compile_context>

<pallas_src>
import functools
import math

import jax
import jax.numpy as jnp
import numpy as np
from jax.experimental import pallas as pl
from jax.experimental.pallas import tpu as pltpu

_TAPS = ((0, 0), (0, 1), (1, 0), (1, 1))  # (ii, jj) offsets of a 2x2 window


# ------------------------------- fused kernel --------------------------------

def _critic_kernel(xs_ref, act_ref,
                   w1_ref, b1_ref, w2_ref, b2_ref,
                   wfc1_ref, bfc1_ref,
                   wfc2h_ref, wfc2x_ref, bfc2_ref,
                   wfc3_ref, bfc3_ref,
                   q_ref,
                   c1_ref, c2_ref, flat_ref,
                   *, B, img_c, gw, oh2, ow2, c2_ch, span1, span2,
                   action_size, num_rel_positions, conv_flat):
    f32 = jnp.float32
    K1 = img_c * 4  # s2d feature columns (c, di, dj) consumed by the convolutions

    # ---- conv1: 4x4 stride-2 conv == 2x2 stride-1 conv over the s2d grid. ----
    # Rows are (y*gw + x)*B + b, so tap (ii, jj) is the whole input shifted by
    # (ii*gw + jj)*B rows: one contiguous slab -> one matmul per tap.
    parts1 = []
    for t, (ii, jj) in enumerate(_TAPS):
        off = (ii * gw + jj) * B
        slab = xs_ref[off:off + span1, 0:K1]                       # (span1, 12)
        parts1.append(jnp.dot(slab, w1_ref[t], preferred_element_type=f32))
    acc1 = (parts1[0] + parts1[1]) + (parts1[2] + parts1[3])
    c1_ref[...] = jnp.maximum(acc1 + b1_ref[...], 0.0)             # grid layout

    # ---- conv2: 2x2 stride-1 conv, same full-span-shift trick over c1. ----
    parts2 = []
    for t, (ii, jj) in enumerate(_TAPS):
        off = (ii * gw + jj) * B
        slab = c1_ref[off:off + span2, :]                          # (span2, 32)
        parts2.append(jnp.dot(slab, w2_ref[t], preferred_element_type=f32))
    acc2 = (parts2[0] + parts2[1]) + (parts2[2] + parts2[3])
    c2_ref[...] = jnp.maximum(acc2 + b2_ref[...], 0.0)             # (span2, 64)

    # ---- flatten valid conv2 rows into (B, npos*64) matching the row-permuted ----
    # fc1 weight, then append the action columns so fc1 is a single matmul.
    for h in range(oh2):
        for w in range(ow2):
            r = (h * gw + w) * B
            p = h * ow2 + w
            flat_ref[:, p * c2_ch:(p + 1) * c2_ch] = c2_ref[r:r + B, :]
    flat_ref[:, conv_flat:conv_flat + action_size] = act_ref[...]

    # ---- fc1 (one MXU matmul over [conv_flat | action] columns) ----
    y1 = jnp.dot(flat_ref[...], wfc1_ref[...], preferred_element_type=f32)
    y1 = jnp.maximum(y1 + bfc1_ref[...], 0.0)                      # (B, hidden)

    # ---- xyz = (state[:, -1, 0, 0], state[:, -1, 0, 1]) read off the s2d input ----
    xyz = xs_ref[0:B, K1:K1 + num_rel_positions]                   # (B, 2)

    # ---- fc2 (K-split: hidden part on MXU, 2-wide xyz part on VPU) ----
    y2 = jnp.dot(y1, wfc2h_ref[...], preferred_element_type=f32)
    for j in range(num_rel_positions):
        y2 = y2 + xyz[:, j:j + 1] * wfc2x_ref[j:j + 1, :]
    y2 = jnp.maximum(y2 + bfc2_ref[...], 0.0)                      # (B, hidden+2)

    # ---- fc3 ----
    q_ref[...] = jnp.dot(y2, wfc3_ref[...], preferred_element_type=f32) + bfc3_ref[...]


# --------------------------------- forward -----------------------------------

def critic_forward(kparams, state, action):
    """state: (B, C, H, W), action: (B, action_size) -> Q: (B, 1)."""
    state = state.astype(jnp.float32)
    action = action.astype(jnp.float32)
    B, C, H, W = state.shape
    assert H % 2 == 0 and W % 2 == 0
    img_c = C - 1
    gh, gw = H // 2, W // 2
    oh1, ow1 = gh - 1, gw - 1            # == (H-4)//2 + 1 for even H
    oh2, ow2 = oh1 - 1, ow1 - 1
    c2_ch = 64
    npos = oh2 * ow2
    conv_flat = npos * c2_ch
    action_size = action.shape[1]
    num_rel = kparams["fc2_wx"].shape[0]

    # Output-row spans (grid layout) covered by the shifted-slab matmuls.
    span1 = ((oh1 - 1) * gw + ow1) * B   # max tap read = span1-1+(gw+1)*B = gh*gw*B-1
    span2 = ((oh2 - 1) * gw + ow2) * B   # max tap read = span2-1+(gw+1)*B = span1-1

    # Space-to-depth: xs[(y*gw + x)*B + b, c*4 + di*2 + dj] = state[b, c, 2y+di, 2x+dj].
    xs = state.reshape(B, C, gh, 2, gw, 2).transpose(2, 4, 0, 1, 3, 5)
    xs = xs.reshape(gh * gw * B, C * 4)

    kernel = functools.partial(
        _critic_kernel, B=B, img_c=img_c, gw=gw, oh2=oh2, ow2=ow2, c2_ch=c2_ch,
        span1=span1, span2=span2, action_size=action_size,
        num_rel_positions=num_rel, conv_flat=conv_flat)

    vmem = pl.BlockSpec(memory_space=pltpu.MemorySpace.VMEM)
    return pl.pallas_call(
        kernel,
        out_shape=jax.ShapeDtypeStruct((B, 1), jnp.float32),
        in_specs=[vmem] * 13,
        out_specs=vmem,
        scratch_shapes=[
            pltpu.VMEM((span1, 32), jnp.float32),                  # conv1 (grid layout)
            pltpu.VMEM((span2, c2_ch), jnp.float32),               # conv2 (grid layout)
            pltpu.VMEM((B, conv_flat + action_size), jnp.float32), # fc1 input
        ],
    )(xs, action,
      kparams["w1"], kparams["b1"], kparams["w2"], kparams["b2"],
      kparams["fc1_w"], kparams["fc1_b"],
      kparams["fc2_wh"], kparams["fc2_wx"], kparams["fc2_b"],
      kparams["fc3_w"], kparams["fc3_b"])


# ------------------------------- parameters ----------------------------------

def init_params(key, input_dims, action_size, hidden_size=32,
                num_rel_positions=2, init_w=3e-3):
    """PyTorch-layout params (Conv2d: (O,C,kh,kw); Linear: (out,in)); init matches the
    reference (hidden_init uses fan_in = weight.size(0); biases keep default init)."""
    C, H, W = input_dims
    img_c = C - 1
    oh1, ow1 = (H - 4) // 2 + 1, (W - 4) // 2 + 1
    oh2, ow2 = oh1 - 1, ow1 - 1
    fc1_in = 64 * oh2 * ow2 + action_size
    h2 = hidden_size + num_rel_positions

    ks = jax.random.split(key, 10)

    def u(k, shape, lim):
        return jax.random.uniform(k, shape, jnp.float32, -lim, lim)

    lim_c1 = 1.0 / math.sqrt(img_c * 4 * 4)
    lim_c2 = 1.0 / math.sqrt(32 * 2 * 2)
    return {
        "conv1_w": u(ks[0], (32, img_c, 4, 4), lim_c1),
        "conv1_b": u(ks[1], (32,), lim_c1),
        "conv2_w": u(ks[2], (64, 32, 2, 2), lim_c2),
        "conv2_b": u(ks[3], (64,), lim_c2),
        "fc1_w": u(ks[4], (hidden_size, fc1_in), 1.0 / math.sqrt(hidden_size)),
        "fc1_b": u(ks[5], (hidden_size,), 1.0 / math.sqrt(fc1_in)),
        "fc2_w": u(ks[6], (h2, h2), 1.0 / math.sqrt(h2)),
        "fc2_b": u(ks[7], (h2,), 1.0 / math.sqrt(h2)),
        "fc3_w": u(ks[8], (1, h2), init_w),
        "fc3_b": u(ks[9], (1,), 1.0 / math.sqrt(h2)),
    }


def prepare_params(p, input_dims, action_size, hidden_size=32):
    """One-time conversion of PyTorch-layout params into the kernel's layouts
    (hoisted out of the per-forward hot path)."""
    C, H, W = input_dims
    img_c = C - 1
    oh1, ow1 = (H - 4) // 2 + 1, (W - 4) // 2 + 1
    oh2, ow2 = oh1 - 1, ow1 - 1
    npos = oh2 * ow2
    k1 = img_c * 4

    # conv1 (O,C,4,4) -> (4, k1, O): tap t = ii*2+jj, row = c*4 + di*2 + dj for the
    # original kernel offset (2*ii+di, 2*jj+dj) -- matches the s2d input columns.
    w1 = p["conv1_w"].reshape(32, img_c, 2, 2, 2, 2)            # (o, c, ii, di, jj, dj)
    w1 = w1.transpose(2, 4, 1, 3, 5, 0).reshape(4, k1, 32)
    # conv2 (O,Ci,2,2) -> (4, Ci, O): tap t = ii*2+jj.
    w2 = p["conv2_w"].transpose(2, 3, 1, 0).reshape(4, 32, 64)
    # fc1: PyTorch flattens conv2 (NCHW) as o*npos + (h*ow2 + w); kernel flat scratch is
    # (h*ow2 + w)*64 + o -> permute rows once here; append the action block so fc1 is
    # a single matmul over [conv_flat | action] columns.
    wc = p["fc1_w"][:, :64 * npos].reshape(hidden_size, 64, npos)    # (n, o, p)
    fc1_wc = wc.transpose(2, 1, 0).reshape(npos * 64, hidden_size)   # rows p*64 + o
    fc1_wa = p["fc1_w"][:, 64 * npos:].T                             # (action, hidden)
    fc1_w = jnp.concatenate([fc1_wc, fc1_wa], axis=0)                # (npos*64+A, hidden)
    fc2_wh = p["fc2_w"][:, :hidden_size].T
    fc2_wx = p["fc2_w"][:, hidden_size:].T
    return {
        "w1": w1, "b1": p["conv1_b"].reshape(1, -1),
        "w2": w2, "b2": p["conv2_b"].reshape(1, -1),
        "fc1_w": fc1_w, "fc1_b": p["fc1_b"].reshape(1, -1),
        "fc2_wh": fc2_wh, "fc2_wx": fc2_wx, "fc2_b": p["fc2_b"].reshape(1, -1),
        "fc3_w": p["fc3_w"].T, "fc3_b": p["fc3_b"].reshape(1, 1),
    }


# ------------------------------ plain-JAX reference ---------------------------

def reference_forward(p, state, action):
    state = state.astype(jnp.float32)
    action = action.astype(jnp.float32)
    dn = ("NCHW", "OIHW", "NCHW")
    with jax.default_matmul_precision("highest"):
        x = state[:, :-1]
        c1 = jax.nn.relu(jax.lax.conv_general_dilated(
            x, p["conv1_w"], (2, 2), "VALID", dimension_numbers=dn)
            + p["conv1_b"][None, :, None, None])
        c2 = jax.nn.relu(jax.lax.conv_general_dilated(
            c1, p["conv2_w"], (1, 1), "VALID", dimension_numbers=dn)
            + p["conv2_b"][None, :, None, None])
        conv_state = c2.reshape(c2.shape[0], -1)
        combined = jnp.concatenate([conv_state, action], axis=1)
        flat1 = jax.nn.relu(combined @ p["fc1_w"].T + p["fc1_b"])
        xyz = jnp.stack([state[:, -1, 0, 0], state[:, -1, 0, 1]], axis=-1)
        cat = jnp.concatenate([flat1, xyz], axis=1)
        flat2 = jax.nn.relu(cat @ p["fc2_w"].T + p["fc2_b"])
        return flat2 @ p["fc3_w"].T + p["fc3_b"]


# ----------------------------------- main --------------------------------------

if __name__ == "__main__":
    key = jax.random.PRNGKey(0)
    k_param, k_state, k_action = jax.random.split(key, 3)

    B = 2
    input_dims = (4, 16, 16)     # (C, H, W); last channel carries the rel-position scalars
    action_size = 4

    torch_params = init_params(k_param, input_dims, action_size,
                               hidden_size=32, num_rel_positions=2, init_w=0.003)
    kparams = prepare_params(torch_params, input_dims, action_size)  # one-time layout prep

    state = jax.random.normal(k_state, (B,) + input_dims, jnp.float32)
    action = jax.random.normal(k_action, (B, action_size), jnp.float32)

    fwd = jax.jit(critic_forward)
    q = fwd(kparams, state, action)
    jax.block_until_ready(q)

    assert q.shape == (B, 1) and q.dtype == jnp.float32
    q_ref = reference_forward(torch_params, state, action)
    assert np.allclose(np.asarray(q), np.asarray(q_ref), rtol=3e-2, atol=5e-3), (
        np.asarray(q), np.asarray(q_ref))
    print("KERNEL_OK")
</pallas_src>

<mosaic_0001>
module attributes {stable_mosaic.version = 11 : i64} {
  func.func @_critic_kernel(%arg0: memref<128x16xf32, #tpu.memory_space<vmem>>, %arg1: memref<2x4xf32, #tpu.memory_space<vmem>>, %arg2: memref<4x12x32xf32, #tpu.memory_space<vmem>>, %arg3: memref<1x32xf32, #tpu.memory_space<vmem>>, %arg4: memref<4x32x64xf32, #tpu.memory_space<vmem>>, %arg5: memref<1x64xf32, #tpu.memory_space<vmem>>, %arg6: memref<2308x32xf32, #tpu.memory_space<vmem>>, %arg7: memref<1x32xf32, #tpu.memory_space<vmem>>, %arg8: memref<32x34xf32, #tpu.memory_space<vmem>>, %arg9: memref<2x34xf32, #tpu.memory_space<vmem>>, %arg10: memref<1x34xf32, #tpu.memory_space<vmem>>, %arg11: memref<34x1xf32, #tpu.memory_space<vmem>>, %arg12: memref<1x1xf32, #tpu.memory_space<vmem>>, %arg13: memref<2x1xf32, #tpu.memory_space<vmem>>, %arg14: memref<110x32xf32, #tpu.memory_space<vmem>>, %arg15: memref<92x64xf32, #tpu.memory_space<vmem>>, %arg16: memref<2x2308xf32, #tpu.memory_space<vmem>>) attributes {dimension_semantics = [], scalar_prefetch = 0 : i64, scratch_operands = 3 : i64, tpu.core_type = #tpu.core_type<tc>} {
    %c0 = arith.constant 0 : index
    %c0_0 = arith.constant 0 : index
    %0 = vector.load %arg0[%c0, %c0_0] : memref<128x16xf32, #tpu.memory_space<vmem>>, vector<110x12xf32>
    %c0_1 = arith.constant 0 : index
    %c0_2 = arith.constant 0 : index
    %c0_3 = arith.constant 0 : index
    %1 = vector.load %arg2[%c0_1, %c0_2, %c0_3] : memref<4x12x32xf32, #tpu.memory_space<vmem>>, vector<1x12x32xf32>
    %2 = vector.shape_cast %1 : vector<1x12x32xf32> to vector<12x32xf32>
    %cst = arith.constant dense<0.000000e+00> : vector<110x32xf32>
    %3 = tpu.matmul %0, %2, %cst {dimension_numbers = #tpu.dot_dimension_numbers<[1], [0], [0], [1], [0, 0, 1, 1], [], []>} : vector<110x12xf32>, vector<12x32xf32>, vector<110x32xf32> -> vector<110x32xf32>
    %c2 = arith.constant 2 : index
    %c0_4 = arith.constant 0 : index
    %4 = vector.load %arg0[%c2, %c0_4] : memref<128x16xf32, #tpu.memory_space<vmem>>, vector<110x12xf32>
    %c1 = arith.constant 1 : index
    %c0_5 = arith.constant 0 : index
    %c0_6 = arith.constant 0 : index
    %5 = vector.load %arg2[%c1, %c0_5, %c0_6] : memref<4x12x32xf32, #tpu.memory_space<vmem>>, vector<1x12x32xf32>
    %6 = vector.shape_cast %5 : vector<1x12x32xf32> to vector<12x32xf32>
    %cst_7 = arith.constant dense<0.000000e+00> : vector<110x32xf32>
    %7 = tpu.matmul %4, %6, %cst_7 {dimension_numbers = #tpu.dot_dimension_numbers<[1], [0], [0], [1], [0, 0, 1, 1], [], []>} : vector<110x12xf32>, vector<12x32xf32>, vector<110x32xf32> -> vector<110x32xf32>
    %c16 = arith.constant 16 : index
    %c0_8 = arith.constant 0 : index
    %8 = vector.load %arg0[%c16, %c0_8] : memref<128x16xf32, #tpu.memory_space<vmem>>, vector<110x12xf32>
    %c2_9 = arith.constant 2 : index
    %c0_10 = arith.constant 0 : index
    %c0_11 = arith.constant 0 : index
    %9 = vector.load %arg2[%c2_9, %c0_10, %c0_11] : memref<4x12x32xf32, #tpu.memory_space<vmem>>, vector<1x12x32xf32>
    %10 = vector.shape_cast %9 : vector<1x12x32xf32> to vector<12x32xf32>
    %cst_12 = arith.constant dense<0.000000e+00> : vector<110x32xf32>
    %11 = tpu.matmul %8, %10, %cst_12 {dimension_numbers = #tpu.dot_dimension_numbers<[1], [0], [0], [1], [0, 0, 1, 1], [], []>} : vector<110x12xf32>, vector<12x32xf32>, vector<110x32xf32> -> vector<110x32xf32>
    %c18 = arith.constant 18 : index
    %c0_13 = arith.constant 0 : index
    %12 = vector.load %arg0[%c18, %c0_13] : memref<128x16xf32, #tpu.memory_space<vmem>>, vector<110x12xf32>
    %c3 = arith.constant 3 : index
    %c0_14 = arith.constant 0 : index
    %c0_15 = arith.constant 0 : index
    %13 = vector.load %arg2[%c3, %c0_14, %c0_15] : memref<4x12x32xf32, #tpu.memory_space<vmem>>, vector<1x12x32xf32>
    %14 = vector.shape_cast %13 : vector<1x12x32xf32> to vector<12x32xf32>
    %cst_16 = arith.constant dense<0.000000e+00> : vector<110x32xf32>
    %15 = tpu.matmul %12, %14, %cst_16 {dimension_numbers = #tpu.dot_dimension_numbers<[1], [0], [0], [1], [0, 0, 1, 1], [], []>} : vector<110x12xf32>, vector<12x32xf32>, vector<110x32xf32> -> vector<110x32xf32>
    %16 = arith.addf %3, %7 : vector<110x32xf32>
    %17 = arith.addf %11, %15 : vector<110x32xf32>
    %18 = arith.addf %16, %17 : vector<110x32xf32>
    %c0_17 = arith.constant 0 : index
    %c0_18 = arith.constant 0 : index
    %19 = vector.load %arg3[%c0_17, %c0_18] : memref<1x32xf32, #tpu.memory_space<vmem>>, vector<1x32xf32>
    %20 = vector.broadcast %19 : vector<1x32xf32> to vector<110x32xf32>
    %21 = arith.addf %18, %20 : vector<110x32xf32>
    %cst_19 = arith.constant 0.000000e+00 : f32
    %22 = vector.broadcast %cst_19 : f32 to vector<110x32xf32>
    %23 = arith.maximumf %21, %22 : vector<110x32xf32>
    %c0_20 = arith.constant 0 : index
    %c0_21 = arith.constant 0 : index
    %24 = vector.load %arg14[%c0_20, %c0_21] : memref<110x32xf32, #tpu.memory_space<vmem>>, vector<110x32xf32>
    tpu.vector_store %arg14[%c0_20, %c0_21], %23 {strides = array<i32>} : memref<110x32xf32, #tpu.memory_space<vmem>>, vector<110x32xf32>,
    %c0_22 = arith.constant 0 : index
    %c0_23 = arith.constant 0 : index
    %25 = vector.load %arg14[%c0_22, %c0_23] : memref<110x32xf32, #tpu.memory_space<vmem>>, vector<92x32xf32>
    %c0_24 = arith.constant 0 : index
    %c0_25 = arith.constant 0 : index
    %c0_26 = arith.constant 0 : index
    %26 = vector.load %arg4[%c0_24, %c0_25, %c0_26] : memref<4x32x64xf32, #tpu.memory_space<vmem>>, vector<1x32x64xf32>
    %27 = vector.shape_cast %26 : vector<1x32x64xf32> to vector<32x64xf32>
    %cst_27 = arith.constant dense<0.000000e+00> : vector<92x64xf32>
    %28 = tpu.matmul %25, %27, %cst_27 {dimension_numbers = #tpu.dot_dimension_numbers<[1], [0], [0], [1], [0, 0, 1, 1], [], []>} : vector<92x32xf32>, vector<32x64xf32>, vector<92x64xf32> -> vector<92x64xf32>
    %c2_28 = arith.constant 2 : index
    %c0_29 = arith.constant 0 : index
    %29 = vector.load %arg14[%c2_28, %c0_29] : memref<110x32xf32, #tpu.memory_space<vmem>>, vector<92x32xf32>
    %c1_30 = arith.constant 1 : index
    %c0_31 = arith.constant 0 : index
    %c0_32 = arith.constant 0 : index
    %30 = vector.load %arg4[%c1_30, %c0_31, %c0_32] : memref<4x32x64xf32, #tpu.memory_space<vmem>>, vector<1x32x64xf32>
    %31 = vector.shape_cast %30 : vector<1x32x64xf32> to vector<32x64xf32>
    %cst_33 = arith.constant dense<0.000000e+00> : vector<92x64xf32>
    %32 = tpu.matmul %29, %31, %cst_33 {dimension_numbers = #tpu.dot_dimension_numbers<[1], [0], [0], [1], [0, 0, 1, 1], [], []>} : vector<92x32xf32>, vector<32x64xf32>, vector<92x64xf32> -> vector<92x64xf32>
    %c16_34 = arith.constant 16 : index
    %c0_35 = arith.constant 0 : index
    %33 = vector.load %arg14[%c16_34, %c0_35] : memref<110x32xf32, #tpu.memory_space<vmem>>, vector<92x32xf32>
    %c2_36 = arith.constant 2 : index
    %c0_37 = arith.constant 0 : index
    %c0_38 = arith.constant 0 : index
    %34 = vector.load %arg4[%c2_36, %c0_37, %c0_38] : memref<4x32x64xf32, #tpu.memory_space<vmem>>, vector<1x32x64xf32>
    %35 = vector.shape_cast %34 : vector<1x32x64xf32> to vector<32x64xf32>
    %cst_39 = arith.constant dense<0.000000e+00> : vector<92x64xf32>
    %36 = tpu.matmul %33, %35, %cst_39 {dimension_numbers = #tpu.dot_dimension_numbers<[1], [0], [0], [1], [0, 0, 1, 1], [], []>} : vector<92x32xf32>, vector<32x64xf32>, vector<92x64xf32> -> vector<92x64xf32>
    %c18_40 = arith.constant 18 : index
    %c0_41 = arith.constant 0 : index
    %37 = vector.load %arg14[%c18_40, %c0_41] : memref<110x32xf32, #tpu.memory_space<vmem>>, vector<92x32xf32>
    %c3_42 = arith.constant 3 : index
    %c0_43 = arith.constant 0 : index
    %c0_44 = arith.constant 0 : index
    %38 = vector.load %arg4[%c3_42, %c0_43, %c0_44] : memref<4x32x64xf32, #tpu.memory_space<vmem>>, vector<1x32x64xf32>
    %39 = vector.shape_cast %38 : vector<1x32x64xf32> to vector<32x64xf32>
    %cst_45 = arith.constant dense<0.000000e+00> : vector<92x64xf32>
    %40 = tpu.matmul %37, %39, %cst_45 {dimension_numbers = #tpu.dot_dimension_numbers<[1], [0], [0], [1], [0, 0, 1, 1], [], []>} : vector<92x32xf32>, vector<32x64xf32>, vector<92x64xf32> -> vector<92x64xf32>
    %41 = arith.addf %28, %32 : vector<92x64xf32>
    %42 = arith.addf %36, %40 : vector<92x64xf32>
    %43 = arith.addf %41, %42 : vector<92x64xf32>
    %c0_46 = arith.constant 0 : index
    %c0_47 = arith.constant 0 : index
    %44 = vector.load %arg5[%c0_46, %c0_47] : memref<1x64xf32, #tpu.memory_space<vmem>>, vector<1x64xf32>
    %45 = vector.broadcast %44 : vector<1x64xf32> to vector<92x64xf32>
    %46 = arith.addf %43, %45 : vector<92x64xf32>
    %cst_48 = arith.constant 0.000000e+00 : f32
    %47 = vector.broadcast %cst_48 : f32 to vector<92x64xf32>
    %48 = arith.maximumf %46, %47 : vector<92x64xf32>
    %c0_49 = arith.constant 0 : index
    %c0_50 = arith.constant 0 : index
    %49 = vector.load %arg15[%c0_49, %c0_50] : memref<92x64xf32, #tpu.memory_space<vmem>>, vector<92x64xf32>
    tpu.vector_store %arg15[%c0_49, %c0_50], %48 {strides = array<i32>} : memref<92x64xf32, #tpu.memory_space<vmem>>, vector<92x64xf32>,
    %c0_51 = arith.constant 0 : index
    %c0_52 = arith.constant 0 : index
    %50 = vector.load %arg15[%c0_51, %c0_52] : memref<92x64xf32, #tpu.memory_space<vmem>>, vector<2x64xf32>
    %c0_53 = arith.constant 0 : index
    %c0_54 = arith.constant 0 : index
    %51 = vector.load %arg16[%c0_53, %c0_54] : memref<2x2308xf32, #tpu.memory_space<vmem>>, vector<2x64xf32>
    tpu.vector_store %arg16[%c0_53, %c0_54], %50 {strides = array<i32>} : memref<2x2308xf32, #tpu.memory_space<vmem>>, vector<2x64xf32>,
    %c2_55 = arith.constant 2 : index
    %c0_56 = arith.constant 0 : index
    %52 = vector.load %arg15[%c2_55, %c0_56] : memref<92x64xf32, #tpu.memory_space<vmem>>, vector<2x64xf32>
    %c0_57 = arith.constant 0 : index
    %c64 = arith.constant 64 : index
    %53 = vector.load %arg16[%c0_57, %c64] : memref<2x2308xf32, #tpu.memory_space<vmem>>, vector<2x64xf32>
    tpu.vector_store %arg16[%c0_57, %c64], %52 {strides = array<i32>} : memref<2x2308xf32, #tpu.memory_space<vmem>>, vector<2x64xf32>,
    %c4 = arith.constant 4 : index
    %c0_58 = arith.constant 0 : index
    %54 = vector.load %arg15[%c4, %c0_58] : memref<92x64xf32, #tpu.memory_space<vmem>>, vector<2x64xf32>
    %c0_59 = arith.constant 0 : index
    %c128 = arith.constant 128 : index
    %55 = vector.load %arg16[%c0_59, %c128] : memref<2x2308xf32, #tpu.memory_space<vmem>>, vector<2x64xf32>
    tpu.vector_store %arg16[%c0_59, %c128], %54 {strides = array<i32>} : memref<2x2308xf32, #tpu.memory_space<vmem>>, vector<2x64xf32>,
    %c6 = arith.constant 6 : index
    %c0_60 = arith.constant 0 : index
    %56 = vector.load %arg15[%c6, %c0_60] : memref<92x64xf32, #tpu.memory_space<vmem>>, vector<2x64xf32>
    %c0_61 = arith.constant 0 : index
    %c192 = arith.constant 192 : index
    %57 = vector.load %arg16[%c0_61, %c192] : memref<2x2308xf32, #tpu.memory_space<vmem>>, vector<2x64xf32>
    tpu.vector_store %arg16[%c0_61, %c192], %56 {strides = array<i32>} : memref<2x2308xf32, #tpu.memory_space<vmem>>, vector<2x64xf32>,
    %c8 = arith.constant 8 : index
    %c0_62 = arith.constant 0 : index
    %58 = vector.load %arg15[%c8, %c0_62] : memref<92x64xf32, #tpu.memory_space<vmem>>, vector<2x64xf32>
    %c0_63 = arith.constant 0 : index
    %c256 = arith.constant 256 : index
    %59 = vector.load %arg16[%c0_63, %c256] : memref<2x2308xf32, #tpu.memory_space<vmem>>, vector<2x64xf32>
    tpu.vector_store %arg16[%c0_63, %c256], %58 {strides = array<i32>} : memref<2x2308xf32, #tpu.memory_space<vmem>>, vector<2x64xf32>,
    %c10 = arith.constant 10 : index
    %c0_64 = arith.constant 0 : index
    %60 = vector.load %arg15[%c10, %c0_64] : memref<92x64xf32, #tpu.memory_space<vmem>>, vector<2x64xf32>
    %c0_65 = arith.constant 0 : index
    %c320 = arith.constant 320 : index
    %61 = vector.load %arg16[%c0_65, %c320] : memref<2x2308xf32, #tpu.memory_space<vmem>>, vector<2x64xf32>
    tpu.vector_store %arg16[%c0_65, %c320], %60 {strides = array<i32>} : memref<2x2308xf32, #tpu.memory_space<vmem>>, vector<2x64xf32>,
    %c16_66 = arith.constant 16 : index
    %c0_67 = arith.constant 0 : index
    %62 = vector.load %arg15[%c16_66, %c0_67] : memref<92x64xf32, #tpu.memory_space<vmem>>, vector<2x64xf32>
    %c0_68 = arith.constant 0 : index
    %c384 = arith.constant 384 : index
    %63 = vector.load %arg16[%c0_68, %c384] : memref<2x2308xf32, #tpu.memory_space<vmem>>, vector<2x64xf32>
    tpu.vector_store %arg16[%c0_68, %c384], %62 {strides = array<i32>} : memref<2x2308xf32, #tpu.memory_space<vmem>>, vector<2x64xf32>,
    %c18_69 = arith.constant 18 : index
    %c0_70 = arith.constant 0 : index
    %64 = vector.load %arg15[%c18_69, %c0_70] : memref<92x64xf32, #tpu.memory_space<vmem>>, vector<2x64xf32>
    %c0_71 = arith.constant 0 : index
    %c448 = arith.constant 448 : index
    %65 = vector.load %arg16[%c0_71, %c448] : memref<2x2308xf32, #tpu.memory_space<vmem>>, vector<2x64xf32>
    tpu.vector_store %arg16[%c0_71, %c448], %64 {strides = array<i32>} : memref<2x2308xf32, #tpu.memory_space<vmem>>, vector<2x64xf32>,
    %c20 = arith.constant 20 : index
    %c0_72 = arith.constant 0 : index
    %66 = vector.load %arg15[%c20, %c0_72] : memref<92x64xf32, #tpu.memory_space<vmem>>, vector<2x64xf32>
    %c0_73 = arith.constant 0 : index
    %c512 = arith.constant 512 : index
    %67 = vector.load %arg16[%c0_73, %c512] : memref<2x2308xf32, #tpu.memory_space<vmem>>, vector<2x64xf32>
    tpu.vector_store %arg16[%c0_73, %c512], %66 {strides = array<i32>} : memref<2x2308xf32, #tpu.memory_space<vmem>>, vector<2x64xf32>,
    %c22 = arith.constant 22 : index
    %c0_74 = arith.constant 0 : index
    %68 = vector.load %arg15[%c22, %c0_74] : memref<92x64xf32, #tpu.memory_space<vmem>>, vector<2x64xf32>
    %c0_75 = arith.constant 0 : index
    %c576 = arith.constant 576 : index
    %69 = vector.load %arg16[%c0_75, %c576] : memref<2x2308xf32, #tpu.memory_space<vmem>>, vector<2x64xf32>
    tpu.vector_store %arg16[%c0_75, %c576], %68 {strides = array<i32>} : memref<2x2308xf32, #tpu.memory_space<vmem>>, vector<2x64xf32>,
    %c24 = arith.constant 24 : index
    %c0_76 = arith.constant 0 : index
    %70 = vector.load %arg15[%c24, %c0_76] : memref<92x64xf32, #tpu.memory_space<vmem>>, vector<2x64xf32>
    %c0_77 = arith.constant 0 : index
    %c640 = arith.constant 640 : index
    %71 = vector.load %arg16[%c0_77, %c640] : memref<2x2308xf32, #tpu.memory_space<vmem>>, vector<2x64xf32>
    tpu.vector_store %arg16[%c0_77, %c640], %70 {strides = array<i32>} : memref<2x2308xf32, #tpu.memory_space<vmem>>, vector<2x64xf32>,
    %c26 = arith.constant 26 : index
    %c0_78 = arith.constant 0 : index
    %72 = vector.load %arg15[%c26, %c0_78] : memref<92x64xf32, #tpu.memory_space<vmem>>, vector<2x64xf32>
    %c0_79 = arith.constant 0 : index
    %c704 = arith.constant 704 : index
    %73 = vector.load %arg16[%c0_79, %c704] : memref<2x2308xf32, #tpu.memory_space<vmem>>, vector<2x64xf32>
    tpu.vector_store %arg16[%c0_79, %c704], %72 {strides = array<i32>} : memref<2x2308xf32, #tpu.memory_space<vmem>>, vector<2x64xf32>,
    %c32 = arith.constant 32 : index
    %c0_80 = arith.constant 0 : index
    %74 = vector.load %arg15[%c32, %c0_80] : memref<92x64xf32, #tpu.memory_space<vmem>>, vector<2x64xf32>
    %c0_81 = arith.constant 0 : index
    %c768 = arith.constant 768 : index
    %75 = vector.load %arg16[%c0_81, %c768] : memref<2x2308xf32, #tpu.memory_space<vmem>>, vector<2x64xf32>
    tpu.vector_store %arg16[%c0_81, %c768], %74 {strides = array<i32>} : memref<2x2308xf32, #tpu.memory_space<vmem>>, vector<2x64xf32>,
    %c34 = arith.constant 34 : index
    %c0_82 = arith.constant 0 : index
    %76 = vector.load %arg15[%c34, %c0_82] : memref<92x64xf32, #tpu.memory_space<vmem>>, vector<2x64xf32>
    %c0_83 = arith.constant 0 : index
    %c832 = arith.constant 832 : index
    %77 = vector.load %arg16[%c0_83, %c832] : memref<2x2308xf32, #tpu.memory_space<vmem>>, vector<2x64xf32>
    tpu.vector_store %arg16[%c0_83, %c832], %76 {strides = array<i32>} : memref<2x2308xf32, #tpu.memory_space<vmem>>, vector<2x64xf32>,
    %c36 = arith.constant 36 : index
    %c0_84 = arith.constant 0 : index
    %78 = vector.load %arg15[%c36, %c0_84] : memref<92x64xf32, #tpu.memory_space<vmem>>, vector<2x64xf32>
    %c0_85 = arith.constant 0 : index
    %c896 = arith.constant 896 : index
    %79 = vector.load %arg16[%c0_85, %c896] : memref<2x2308xf32, #tpu.memory_space<vmem>>, vector<2x64xf32>
    tpu.vector_store %arg16[%c0_85, %c896], %78 {strides = array<i32>} : memref<2x2308xf32, #tpu.memory_space<vmem>>, vector<2x64xf32>,
    %c38 = arith.constant 38 : index
    %c0_86 = arith.constant 0 : index
    %80 = vector.load %arg15[%c38, %c0_86] : memref<92x64xf32, #tpu.memory_space<vmem>>, vector<2x64xf32>
    %c0_87 = arith.constant 0 : index
    %c960 = arith.constant 960 : index
    %81 = vector.load %arg16[%c0_87, %c960] : memref<2x2308xf32, #tpu.memory_space<vmem>>, vector<2x64xf32>
    tpu.vector_store %arg16[%c0_87, %c960], %80 {strides = array<i32>} : memref<2x2308xf32, #tpu.memory_space<vmem>>, vector<2x64xf32>,
    %c40 = arith.constant 40 : index
    %c0_88 = arith.constant 0 : index
    %82 = vector.load %arg15[%c40, %c0_88] : memref<92x64xf32, #tpu.memory_space<vmem>>, vector<2x64xf32>
    %c0_89 = arith.constant 0 : index
    %c1024 = arith.constant 1024 : index
    %83 = vector.load %arg16[%c0_89, %c1024] : memref<2x2308xf32, #tpu.memory_space<vmem>>, vector<2x64xf32>
    tpu.vector_store %arg16[%c0_89, %c1024], %82 {strides = array<i32>} : memref<2x2308xf32, #tpu.memory_space<vmem>>, vector<2x64xf32>,
    %c42 = arith.constant 42 : index
    %c0_90 = arith.constant 0 : index
    %84 = vector.load %arg15[%c42, %c0_90] : memref<92x64xf32, #tpu.memory_space<vmem>>, vector<2x64xf32>
    %c0_91 = arith.constant 0 : index
    %c1088 = arith.constant 1088 : index
    %85 = vector.load %arg16[%c0_91, %c1088] : memref<2x2308xf32, #tpu.memory_space<vmem>>, vector<2x64xf32>
    tpu.vector_store %arg16[%c0_91, %c1088], %84 {strides = array<i32>} : memref<2x2308xf32, #tpu.memory_space<vmem>>, vector<2x64xf32>,
    %c48 = arith.constant 48 : index
    %c0_92 = arith.constant 0 : index
    %86 = vector.load %arg15[%c48, %c0_92] : memref<92x64xf32, #tpu.memory_space<vmem>>, vector<2x64xf32>
    %c0_93 = arith.constant 0 : index
    %c1152 = arith.constant 1152 : index
    %87 = vector.load %arg16[%c0_93, %c1152] : memref<2x2308xf32, #tpu.memory_space<vmem>>, vector<2x64xf32>
    tpu.vector_store %arg16[%c0_93, %c1152], %86 {strides = array<i32>} : memref<2x2308xf32, #tpu.memory_space<vmem>>, vector<2x64xf32>,
    %c50 = arith.constant 50 : index
    %c0_94 = arith.constant 0 : index
    %88 = vector.load %arg15[%c50, %c0_94] : memref<92x64xf32, #tpu.memory_space<vmem>>, vector<2x64xf32>
    %c0_95 = arith.constant 0 : index
    %c1216 = arith.constant 1216 : index
    %89 = vector.load %arg16[%c0_95, %c1216] : memref<2x2308xf32, #tpu.memory_space<vmem>>, vector<2x64xf32>
    tpu.vector_store %arg16[%c0_95, %c1216], %88 {strides = array<i32>} : memref<2x2308xf32, #tpu.memory_space<vmem>>, vector<2x64xf32>,
    %c52 = arith.constant 52 : index
    %c0_96 = arith.constant 0 : index
    %90 = vector.load %arg15[%c52, %c0_96] : memref<92x64xf32, #tpu.memory_space<vmem>>, vector<2x64xf32>
    %c0_97 = arith.constant 0 : index
    %c1280 = arith.constant 1280 : index
    %91 = vector.load %arg16[%c0_97, %c1280] : memref<2x2308xf32, #tpu.memory_space<vmem>>, vector<2x64xf32>
    tpu.vector_store %arg16[%c0_97, %c1280], %90 {strides = array<i32>} : memref<2x2308xf32, #tpu.memory_space<vmem>>, vector<2x64xf32>,
    %c54 = arith.constant 54 : index
    %c0_98 = arith.constant 0 : index
    %92 = vector.load %arg15[%c54, %c0_98] : memref<92x64xf32, #tpu.memory_space<vmem>>, vector<2x64xf32>
    %c0_99 = arith.constant 0 : index
    %c1344 = arith.constant 1344 : index
    %93 = vector.load %arg16[%c0_99, %c1344] : memref<2x2308xf32, #tpu.memory_space<vmem>>, vector<2x64xf32>
    tpu.vector_store %arg16[%c0_99, %c1344], %92 {strides = array<i32>} : memref<2x2308xf32, #tpu.memory_space<vmem>>, vector<2x64xf32>,
    %c56 = arith.constant 56 : index
    %c0_100 = arith.constant 0 : index
    %94 = vector.load %arg15[%c56, %c0_100] : memref<92x64xf32, #tpu.memory_space<vmem>>, vector<2x64xf32>
    %c0_101 = arith.constant 0 : index
    %c1408 = arith.constant 1408 : index
    %95 = vector.load %arg16[%c0_101, %c1408] : memref<2x2308xf32, #tpu.memory_space<vmem>>, vector<2x64xf32>
    tpu.vector_store %arg16[%c0_101, %c1408], %94 {strides = array<i32>} : memref<2x2308xf32, #tpu.memory_space<vmem>>, vector<2x64xf32>,
    %c58 = arith.constant 58 : index
    %c0_102 = arith.constant 0 : index
    %96 = vector.load %arg15[%c58, %c0_102] : memref<92x64xf32, #tpu.memory_space<vmem>>, vector<2x64xf32>
    %c0_103 = arith.constant 0 : index
    %c1472 = arith.constant 1472 : index
    %97 = vector.load %arg16[%c0_103, %c1472] : memref<2x2308xf32, #tpu.memory_space<vmem>>, vector<2x64xf32>
    tpu.vector_store %arg16[%c0_103, %c1472], %96 {strides = array<i32>} : memref<2x2308xf32, #tpu.memory_space<vmem>>, vector<2x64xf32>,
    %c64_104 = arith.constant 64 : index
    %c0_105 = arith.constant 0 : index
    %98 = vector.load %arg15[%c64_104, %c0_105] : memref<92x64xf32, #tpu.memory_space<vmem>>, vector<2x64xf32>
    %c0_106 = arith.constant 0 : index
    %c1536 = arith.constant 1536 : index
    %99 = vector.load %arg16[%c0_106, %c1536] : memref<2x2308xf32, #tpu.memory_space<vmem>>, vector<2x64xf32>
    tpu.vector_store %arg16[%c0_106, %c1536], %98 {strides = array<i32>} : memref<2x2308xf32, #tpu.memory_space<vmem>>, vector<2x64xf32>,
    %c66 = arith.constant 66 : index
    %c0_107 = arith.constant 0 : index
    %100 = vector.load %arg15[%c66, %c0_107] : memref<92x64xf32, #tpu.memory_space<vmem>>, vector<2x64xf32>
    %c0_108 = arith.constant 0 : index
    %c1600 = arith.constant 1600 : index
    %101 = vector.load %arg16[%c0_108, %c1600] : memref<2x2308xf32, #tpu.memory_space<vmem>>, vector<2x64xf32>
    tpu.vector_store %arg16[%c0_108, %c1600], %100 {strides = array<i32>} : memref<2x2308xf32, #tpu.memory_space<vmem>>, vector<2x64xf32>,
    %c68 = arith.constant 68 : index
    %c0_109 = arith.constant 0 : index
    %102 = vector.load %arg15[%c68, %c0_109] : memref<92x64xf32, #tpu.memory_space<vmem>>, vector<2x64xf32>
    %c0_110 = arith.constant 0 : index
    %c1664 = arith.constant 1664 : index
    %103 = vector.load %arg16[%c0_110, %c1664] : memref<2x2308xf32, #tpu.memory_space<vmem>>, vector<2x64xf32>
    tpu.vector_store %arg16[%c0_110, %c1664], %102 {strides = array<i32>} : memref<2x2308xf32, #tpu.memory_space<vmem>>, vector<2x64xf32>,
    %c70 = arith.constant 70 : index
    %c0_111 = arith.constant 0 : index
    %104 = vector.load %arg15[%c70, %c0_111] : memref<92x64xf32, #tpu.memory_space<vmem>>, vector<2x64xf32>
    %c0_112 = arith.constant 0 : index
    %c1728 = arith.constant 1728 : index
    %105 = vector.load %arg16[%c0_112, %c1728] : memref<2x2308xf32, #tpu.memory_space<vmem>>, vector<2x64xf32>
    tpu.vector_store %arg16[%c0_112, %c1728], %104 {strides = array<i32>} : memref<2x2308xf32, #tpu.memory_space<vmem>>, vector<2x64xf32>,
    %c72 = arith.constant 72 : index
    %c0_113 = arith.constant 0 : index
    %106 = vector.load %arg15[%c72, %c0_113] : memref<92x64xf32, #tpu.memory_space<vmem>>, vector<2x64xf32>
    %c0_114 = arith.constant 0 : index
    %c1792 = arith.constant 1792 : index
    %107 = vector.load %arg16[%c0_114, %c1792] : memref<2x2308xf32, #tpu.memory_space<vmem>>, vector<2x64xf32>
    tpu.vector_store %arg16[%c0_114, %c1792], %106 {strides = array<i32>} : memref<2x2308xf32, #tpu.memory_space<vmem>>, vector<2x64xf32>,
    %c74 = arith.constant 74 : index
    %c0_115 = arith.constant 0 : index
    %108 = vector.load %arg15[%c74, %c0_115] : memref<92x64xf32, #tpu.memory_space<vmem>>, vector<2x64xf32>
    %c0_116 = arith.constant 0 : index
    %c1856 = arith.constant 1856 : index
    %109 = vector.load %arg16[%c0_116, %c1856] : memref<2x2308xf32, #tpu.memory_space<vmem>>, vector<2x64xf32>
    tpu.vector_store %arg16[%c0_116, %c1856], %108 {strides = array<i32>} : memref<2x2308xf32, #tpu.memory_space<vmem>>, vector<2x64xf32>,
    %c80 = arith.constant 80 : index
    %c0_117 = arith.constant 0 : index
    %110 = vector.load %arg15[%c80, %c0_117] : memref<92x64xf32, #tpu.memory_space<vmem>>, vector<2x64xf32>
    %c0_118 = arith.constant 0 : index
    %c1920 = arith.constant 1920 : index
    %111 = vector.load %arg16[%c0_118, %c1920] : memref<2x2308xf32, #tpu.memory_space<vmem>>, vector<2x64xf32>
    tpu.vector_store %arg16[%c0_118, %c1920], %110 {strides = array<i32>} : memref<2x2308xf32, #tpu.memory_space<vmem>>, vector<2x64xf32>,
    %c82 = arith.constant 82 : index
    %c0_119 = arith.constant 0 : index
    %112 = vector.load %arg15[%c82, %c0_119] : memref<92x64xf32, #tpu.memory_space<vmem>>, vector<2x64xf32>
    %c0_120 = arith.constant 0 : index
    %c1984 = arith.constant 1984 : index
    %113 = vector.load %arg16[%c0_120, %c1984] : memref<2x2308xf32, #tpu.memory_space<vmem>>, vector<2x64xf32>
    tpu.vector_store %arg16[%c0_120, %c1984], %112 {strides = array<i32>} : memref<2x2308xf32, #tpu.memory_space<vmem>>, vector<2x64xf32>,
    %c84 = arith.constant 84 : index
    %c0_121 = arith.constant 0 : index
    %114 = vector.load %arg15[%c84, %c0_121] : memref<92x64xf32, #tpu.memory_space<vmem>>, vector<2x64xf32>
    %c0_122 = arith.constant 0 : index
    %c2048 = arith.constant 2048 : index
    %115 = vector.load %arg16[%c0_122, %c2048] : memref<2x2308xf32, #tpu.memory_space<vmem>>, vector<2x64xf32>
    tpu.vector_store %arg16[%c0_122, %c2048], %114 {strides = array<i32>} : memref<2x2308xf32, #tpu.memory_space<vmem>>, vector<2x64xf32>,
    %c86 = arith.constant 86 : index
    %c0_123 = arith.constant 0 : index
    %116 = vector.load %arg15[%c86, %c0_123] : memref<92x64xf32, #tpu.memory_space<vmem>>, vector<2x64xf32>
    %c0_124 = arith.constant 0 : index
    %c2112 = arith.constant 2112 : index
    %117 = vector.load %arg16[%c0_124, %c2112] : memref<2x2308xf32, #tpu.memory_space<vmem>>, vector<2x64xf32>
    tpu.vector_store %arg16[%c0_124, %c2112], %116 {strides = array<i32>} : memref<2x2308xf32, #tpu.memory_space<vmem>>, vector<2x64xf32>,
    %c88 = arith.constant 88 : index
    %c0_125 = arith.constant 0 : index
    %118 = vector.load %arg15[%c88, %c0_125] : memref<92x64xf32, #tpu.memory_space<vmem>>, vector<2x64xf32>
    %c0_126 = arith.constant 0 : index
    %c2176 = arith.constant 2176 : index
    %119 = vector.load %arg16[%c0_126, %c2176] : memref<2x2308xf32, #tpu.memory_space<vmem>>, vector<2x64xf32>
    tpu.vector_store %arg16[%c0_126, %c2176], %118 {strides = array<i32>} : memref<2x2308xf32, #tpu.memory_space<vmem>>, vector<2x64xf32>,
    %c90 = arith.constant 90 : index
    %c0_127 = arith.constant 0 : index
    %120 = vector.load %arg15[%c90, %c0_127] : memref<92x64xf32, #tpu.memory_space<vmem>>, vector<2x64xf32>
    %c0_128 = arith.constant 0 : index
    %c2240 = arith.constant 2240 : index
    %121 = vector.load %arg16[%c0_128, %c2240] : memref<2x2308xf32, #tpu.memory_space<vmem>>, vector<2x64xf32>
    tpu.vector_store %arg16[%c0_128, %c2240], %120 {strides = array<i32>} : memref<2x2308xf32, #tpu.memory_space<vmem>>, vector<2x64xf32>,
    %c0_129 = arith.constant 0 : index
    %c0_130 = arith.constant 0 : index
    %122 = vector.load %arg1[%c0_129, %c0_130] : memref<2x4xf32, #tpu.memory_space<vmem>>, vector<2x4xf32>
    %c0_131 = arith.constant 0 : index
    %c2304 = arith.constant 2304 : index
    %123 = vector.load %arg16[%c0_131, %c2304] : memref<2x2308xf32, #tpu.memory_space<vmem>>, vector<2x4xf32>
    tpu.vector_store %arg16[%c0_131, %c2304], %122 {strides = array<i32>} : memref<2x2308xf32, #tpu.memory_space<vmem>>, vector<2x4xf32>,
    %c0_132 = arith.constant 0 : index
    %c0_133 = arith.constant 0 : index
    %124 = vector.load %arg16[%c0_132, %c0_133] : memref<2x2308xf32, #tpu.memory_space<vmem>>, vector<2x2308xf32>
    %c0_134 = arith.constant 0 : index
    %c0_135 = arith.constant 0 : index
    %125 = vector.load %arg6[%c0_134, %c0_135] : memref<2308x32xf32, #tpu.memory_space<vmem>>, vector<2308x32xf32>
    %cst_136 = arith.constant dense<0.000000e+00> : vector<2x32xf32>
    %126 = tpu.matmul %124, %125, %cst_136 {dimension_numbers = #tpu.dot_dimension_numbers<[1], [0], [0], [1], [0, 0, 1, 1], [], []>} : vector<2x2308xf32>, vector<2308x32xf32>, vector<2x32xf32> -> vector<2x32xf32>
    %c0_137 = arith.constant 0 : index
    %c0_138 = arith.constant 0 : index
    %127 = vector.load %arg7[%c0_137, %c0_138] : memref<1x32xf32, #tpu.memory_space<vmem>>, vector<1x32xf32>
    %128 = vector.broadcast %127 : vector<1x32xf32> to vector<2x32xf32>
    %129 = arith.addf %126, %128 : vector<2x32xf32>
    %cst_139 = arith.constant 0.000000e+00 : f32
    %130 = vector.broadcast %cst_139 : f32 to vector<2x32xf32>
    %131 = arith.maximumf %129, %130 : vector<2x32xf32>
    %c0_140 = arith.constant 0 : index
    %c12 = arith.constant 12 : index
    %132 = vector.load %arg0[%c0_140, %c12] : memref<128x16xf32, #tpu.memory_space<vmem>>, vector<2x2xf32>
    %c0_141 = arith.constant 0 : index
    %c0_142 = arith.constant 0 : index
    %133 = vector.load %arg8[%c0_141, %c0_142] : memref<32x34xf32, #tpu.memory_space<vmem>>, vector<32x34xf32>
    %cst_143 = arith.constant dense<0.000000e+00> : vector<2x34xf32>
    %134 = tpu.matmul %131, %133, %cst_143 {dimension_numbers = #tpu.dot_dimension_numbers<[1], [0], [0], [1], [0, 0, 1, 1], [], []>} : vector<2x32xf32>, vector<32x34xf32>, vector<2x34xf32> -> vector<2x34xf32>
    %135 = vector.extract_strided_slice %132 {offsets = [0, 0], sizes = [2, 1], strides = [1, 1]} : vector<2x2xf32> to vector<2x1xf32>
    %c0_144 = arith.constant 0 : index
    %c0_145 = arith.constant 0 : index
    %136 = vector.load %arg9[%c0_144, %c0_145] : memref<2x34xf32, #tpu.memory_space<vmem>>, vector<1x34xf32>
    %137 = vector.broadcast %135 : vector<2x1xf32> to vector<2x34xf32>
    %138 = vector.broadcast %136 : vector<1x34xf32> to vector<2x34xf32>
    %139 = arith.mulf %137, %138 : vector<2x34xf32>
    %140 = arith.addf %134, %139 : vector<2x34xf32>
    %141 = vector.extract_strided_slice %132 {offsets = [0, 1], sizes = [2, 1], strides = [1, 1]} : vector<2x2xf32> to vector<2x1xf32>
    %c1_146 = arith.constant 1 : index
    %c0_147 = arith.constant 0 : index
    %142 = vector.load %arg9[%c1_146, %c0_147] : memref<2x34xf32, #tpu.memory_space<vmem>>, vector<1x34xf32>
    %143 = vector.broadcast %141 : vector<2x1xf32> to vector<2x34xf32>
    %144 = vector.broadcast %142 : vector<1x34xf32> to vector<2x34xf32>
    %145 = arith.mulf %143, %144 : vector<2x34xf32>
    %146 = arith.addf %140, %145 : vector<2x34xf32>
    %c0_148 = arith.constant 0 : index
    %c0_149 = arith.constant 0 : index
    %147 = vector.load %arg10[%c0_148, %c0_149] : memref<1x34xf32, #tpu.memory_space<vmem>>, vector<1x34xf32>
    %148 = vector.broadcast %147 : vector<1x34xf32> to vector<2x34xf32>
    %149 = arith.addf %146, %148 : vector<2x34xf32>
    %cst_150 = arith.constant 0.000000e+00 : f32
    %150 = vector.broadcast %cst_150 : f32 to vector<2x34xf32>
    %151 = arith.maximumf %149, %150 : vector<2x34xf32>
    %c0_151 = arith.constant 0 : index
    %c0_152 = arith.constant 0 : index
    %152 = vector.load %arg11[%c0_151, %c0_152] : memref<34x1xf32, #tpu.memory_space<vmem>>, vector<34x1xf32>
    %cst_153 = arith.constant dense<0.000000e+00> : vector<2x1xf32>
    %153 = tpu.matmul %151, %152, %cst_153 {dimension_numbers = #tpu.dot_dimension_numbers<[1], [0], [0], [1], [0, 0, 1, 1], [], []>} : vector<2x34xf32>, vector<34x1xf32>, vector<2x1xf32> -> vector<2x1xf32>
    %c0_154 = arith.constant 0 : index
    %c0_155 = arith.constant 0 : index
    %154 = vector.load %arg12[%c0_154, %c0_155] : memref<1x1xf32, #tpu.memory_space<vmem>>, vector<1x1xf32>
    %155 = vector.broadcast %154 : vector<1x1xf32> to vector<2x1xf32>
    %156 = arith.addf %153, %155 : vector<2x1xf32>
    %c0_156 = arith.constant 0 : index
    %c0_157 = arith.constant 0 : index
    %157 = vector.load %arg13[%c0_156, %c0_157] : memref<2x1xf32, #tpu.memory_space<vmem>>, vector<2x1xf32>
    tpu.vector_store %arg13[%c0_156, %c0_157], %156 {strides = array<i32>} : memref<2x1xf32, #tpu.memory_space<vmem>>, vector<2x1xf32>,
    return
  }
}

</mosaic_0001>

<bundles_post_ra>
// kernel: critic_forward.1
= control target key start
LH: loop header
LB: loop body
LE: loop exit
PB: predicated region body
PF: predicated region fallthrough
CT: control target
= control target key end

     0   :  { %vm122_vm0 = vcmask 1043456   ;;  %vm79_vm1 = vcmask 97280   ;;  %vm884_vm2 = vcmask 261120   ;;  %vm898_vm3 = vcmask 259072   ;;  %s4126_s16 = smov 64   ;;  %s5689_s2 = inlined_call_operand.vmem [shape: f32[4,12,32], index: 2, kind: input, shape index: {}]   ;;  %s5690_s0 = inlined_call_operand.vmem [shape: f32[128,16], index: 0, kind: input, shape index: {}]   ;;  %s5691_s4 = inlined_call_operand.vmem [shape: f32[4,32,64], index: 4, kind: input, shape index: {}]   ;;  %s5692_s3 = inlined_call_operand.vmem [shape: f32[1,32], index: 3, kind: input, shape index: {}]   ;;  %s5693_s6 = inlined_call_operand.vmem [shape: f32[2308,32], index: 6, kind: input, shape index: {}]   ;;  %s5694_s5 = inlined_call_operand.vmem [shape: f32[1,64], index: 5, kind: input, shape index: {}]   ;;  %s5695_s1 = inlined_call_operand.vmem [shape: f32[2,4], index: 1, kind: input, shape index: {}]   ;;  %s5696_s8 = inlined_call_operand.vmem [shape: f32[32,34], index: 8, kind: input, shape index: {}]   ;;  %s5697_s7 = inlined_call_operand.vmem [shape: f32[1,32], index: 7, kind: input, shape index: {}]   ;;  %s5698_s11 = inlined_call_operand.vmem [shape: f32[34,1], index: 11, kind: input, shape index: {}]   ;;  %s5699_s12 = inlined_call_operand.<no memory space> [shape: f32[1,1], index: 12, kind: input, shape index: {}]   ;;  %s5700_s9 = inlined_call_operand.vmem [shape: f32[2,34], index: 9, kind: input, shape index: {}]   ;;  %s5701_s10 = inlined_call_operand.vmem [shape: f32[1,34], index: 10, kind: input, shape index: {}]   ;;  %s5702_s13 = inlined_call_operand.vmem [shape: f32[2,1], index: 13, kind: output, shape index: {}]  }
   0x1   :  { %v3264_v0 = vld [vmem:[%s5689_s2 + $0x18] sm:$0xf]  ;;  %v3263_v1 = vld [vmem:[%s5689_s2 + $0x10] sm:$0xff]  ;;  %v62_v2 = vld [vmem:[%s5690_s0 + $0x2] sm:$0xff]  ;;  %vm1654_vm4 = vcmask 523264   ;;  %vm1669_vm5 = vcmask 517120  }
   0x2   :  { %3875 = vmatprep.subr.msk.mxu0 %vm122_vm0, %v3264_v0  ;;  %4108 = vmatprep.subr.msk.mxu1 %vm122_vm0, %v3264_v0  ;;  %v74_v3 = vld [vmem:[%s5690_s0 + $0x62] sm:$0xff]  ;;  %v63_v4 = vld [vmem:[%s5690_s0 + $0xa] sm:$0xff]  ;;  %v3283_v6 = vld [vmem:[%s5689_s2 + $0x38] sm:$0xf]  ;;  %vm1666_vm6 = vcmask 519168   ;;  %vm1941_vm7 = vcmask 25600  }
   0x3   :  { %3876 = vmatpush3.msk.msra.mxu0 %vm122_vm0, %v3264_v0  ;;  %4110 = vmatpush3.msk.msra.mxu1 %vm122_vm0, %v3264_v0  ;;  %v75_v5 = vld [vmem:[%s5690_s0 + $0x6a] sm:$0x3f]  ;;  %v64_v7 = vld [vmem:[%s5690_s0 + $0x12] sm:$0xff]  ;;  %v65_v10 = vld [vmem:[%s5690_s0 + $0x1a] sm:$0xff]  ;;  %vm1683_vm8 = vcmask 1041920   ;;  %vm2351_vm9 = vcmask 31744  }
   0x4   :  { %3877 = vmatprep.subr.mxu0 %v3263_v1  ;;  %4109 = vmatprep.subr.mxu1 %v3263_v1  ;;  %v3282_v8 = vld [vmem:[%s5689_s2 + $0x30] sm:$0xff]  ;;  %v61_v9 = vld [vmem:[%s5689_s2 + $0x8] sm:$0xf]  ;;  %v3280_v14 = vld [vmem:[%s5689_s2 + $0x20] sm:$0xff]  ;;  %vm4129_vm10 = vmmov 0   ;;  %vm3183_vm11 = vcmask 1041408  }
   0x5   :  { %3878 = vmatpush3.msra.mxu0 %v3263_v1  ;;  %4111 = vmatpush3.msra.mxu1 %v3263_v1  ;;  %v3281_v11 = vld [vmem:[%s5689_s2 + $0x28] sm:$0xf]  ;;  %v68_v15 = vld [vmem:[%s5690_s0 + $0x32] sm:$0xff]  ;;  %v60_v16 = vld [vmem:[%s5689_s2] sm:$0xff]  ;;  %vm3179_vm12 = vcmask 277504   ;;  %vm3257_vm13 = vcmask 1024  }
   0x6   :  { %3879 = vmatprep.mubr.msk.f32.mxu0 %vm79_vm1, %v62_v2  ;;  %3897 = vmatprep.mubr.msk.f32.mxu1 %vm79_vm1, %v74_v3  ;;  %v66_v12 = vld [vmem:[%s5690_s0 + $0x22] sm:$0xff]  ;;  %v67_v13 = vld [vmem:[%s5690_s0 + $0x2a] sm:$0xff]  ;;  %v69_v17 = vld [vmem:[%s5690_s0 + $0x3a] sm:$0xff] }
   0x7   :  { %3880 = vmatmul.mubr.msk.f32.vlgmr.msra.gmra.mxu0 %vm79_vm1, %v63_v4  ;;  %3898 = vmatmul.mubr.msk.f32.vlgmr.msra.gmra.mxu1 %vm79_vm1, %v75_v5  ;;  %v70_v18 = vld [vmem:[%s5690_s0 + $0x42] sm:$0xff]  ;;  %v71_v19 = vld [vmem:[%s5690_s0 + $0x4a] sm:$0xff]  ;;  %v72_v20 = vld [vmem:[%s5690_s0 + $0x52] sm:$0xff] }
   0x8   :  { %3900 = vmatprep.subr.msk.mxu1 %vm122_vm0, %v3283_v6  ;;  %3882 = vmatprep.mubr.msk.f32.mxu0 %vm79_vm1, %v64_v7  ;;  %v73_v21 = vld [vmem:[%s5690_s0 + $0x5a] sm:$0xff]  ;;  %v47_v23 = vld [vmem:[%s5690_s0 + $0x8] sm:$0xff]  ;;  %v48_v25 = vld [vmem:[%s5690_s0 + $0x10] sm:$0xff] }
   0x9   :  { %3901 = vmatpush3.msk.msra.mxu1 %vm122_vm0, %v3283_v6  ;;  %3904 = vmatprep.mubr.msk.f32.mxu1 %vm79_vm1, %v64_v7  ;;  %v46_v22 = vld [vmem:[%s5690_s0] sm:$0xff]  ;;  %v289_v24 = vld [vmem:[%s5690_s0 + $0x6a] sm:$0xff]  ;;  %v290_v26 = vld [vmem:[%s5690_s0 + $0x72] sm:$0xff] }
   0xa   :  { %3902 = vmatprep.subr.mxu1 %v3282_v8  ;;  %3925 = vmatprep.subr.msk.mxu0 %vm122_vm0, %v61_v9  ;;  %v49_v27 = vld [vmem:[%s5690_s0 + $0x18] sm:$0xff]  ;;  %v50_v29 = vld [vmem:[%s5690_s0 + $0x20] sm:$0xff]  ;;  %v51_v30 = vld [vmem:[%s5690_s0 + $0x28] sm:$0xff] }
   0xb   :  { %3903 = vmatpush3.msra.mxu1 %v3282_v8  ;;  %3883 = vmatmul.mubr.msk.f32.gmra.mxu0 %vm79_vm1, %v65_v10  ;;  %v291_v28 = vld [vmem:[%s5690_s0 + $0x7a] sm:$0x3f]  ;;  %v52_v31 = vld [vmem:[%s5690_s0 + $0x30] sm:$0xff]  ;;  %v54_v33 = vld [vmem:[%s5690_s0 + $0x40] sm:$0xff] }
   0xc   :  { %3905 = vmatmul.mubr.msk.f32.vlgmr.msra.gmra.mxu1 %vm79_vm1, %v65_v10  ;;  %3950 = vmatprep.subr.msk.mxu1 %vm122_vm0, %v3281_v11  ;;  %v53_v32 = vld [vmem:[%s5690_s0 + $0x38] sm:$0xff]  ;;  %v55_v34 = vld [vmem:[%s5690_s0 + $0x48] sm:$0xff]  ;;  %v56_v35 = vld [vmem:[%s5690_s0 + $0x50] sm:$0xff] }
   0xd   :  { %3951 = vmatpush3.msk.msra.mxu1 %vm122_vm0, %v3281_v11  ;;  %3885 = vmatprep.mubr.msk.f32.mxu0 %vm79_vm1, %v66_v12  ;;  %v57_v36 = vld [vmem:[%s5690_s0 + $0x58] sm:$0xff]  ;;  %v58_v37 = vld [vmem:[%s5690_s0 + $0x60] sm:$0xff]  ;;  %v59_v38 = vld [vmem:[%s5690_s0 + $0x68] sm:$0x3f] }
   0xe   :  { %3907 = vmatprep.mubr.msk.f32.mxu1 %vm79_vm1, %v66_v12  ;;  %3926 = vmatpush3.msk.msra.mxu0 %vm122_vm0, %v61_v9  ;;  %v272_v39 = vld [vmem:[%s5690_s0 + $0x68] sm:$0xff]  ;;  %v273_v40 = vld [vmem:[%s5690_s0 + $0x70] sm:$0xff]  ;;  %v274_v41 = vld [vmem:[%s5690_s0 + $0x78] sm:$0x3f] }
   0xf   :  { %3886 = vmatmul.mubr.msk.f32.gmra.mxu0 %vm79_vm1, %v67_v13  ;;  %3952 = vmatprep.subr.mxu1 %v3280_v14  ;;  %v3333_v42 = vld [vmem:[%s5691_s4 + $0x38] sm:$0xff]  ;;  %v3332_v44 = vld [vmem:[%s5691_s4 + $0x30] sm:$0xff]  ;;  %v3331_v46 = vld [vmem:[%s5691_s4 + $0x28] sm:$0xff] }
  0x10   :  { %3908 = vmatmul.mubr.msk.f32.gmra.mxu1 %vm79_vm1, %v67_v13  ;;  %3888 = vmatprep.mubr.msk.f32.mxu0 %vm79_vm1, %v68_v15  ;;  %v3353_v43 = vld [vmem:[%s5691_s4 + $0x78] sm:$0xff]  ;;  %v3352_v45 = vld [vmem:[%s5691_s4 + $0x70] sm:$0xff]  ;;  %v3330_v47 = vld [vmem:[%s5691_s4 + $0x20] sm:$0xff] }
  0x11   :  { %3910 = vmatprep.mubr.msk.f32.mxu1 %vm79_vm1, %v68_v15  ;;  %3953 = vmatpush3.msra.mxu1 %v3280_v14  ;;  %v3351_v48 = vld [vmem:[%s5691_s4 + $0x68] sm:$0xff]  ;;  %v3350_v49 = vld [vmem:[%s5691_s4 + $0x60] sm:$0xff]  ;;  %v4421_v50 = vld [vmem:[%s5691_s4 + $0x18] sm:$0xff] }
  0x12   :  { %3927 = vmatprep.subr.mxu0 %v60_v16  ;;  %4001 = vmatprep.subr.mxu1 %v3353_v43  ;;  %v4426_v51 = vld [vmem:[%s5691_s4 + $0x58] sm:$0xff] }
  0x13   :  { %3889 = vmatmul.mubr.msk.f32.gmra.mxu0 %vm79_vm1, %v69_v17 }
  0x14   :  { %3911 = vmatmul.mubr.msk.f32.gmra.mxu1 %vm79_vm1, %v69_v17  ;;  %3891 = vmatprep.mubr.msk.f32.mxu0 %vm79_vm1, %v70_v18 }
  0x15   :  { %3913 = vmatprep.mubr.msk.f32.mxu1 %vm79_vm1, %v70_v18  ;;  %3928 = vmatpush3.msra.mxu0 %v60_v16 }
  0x16   :  { %3975 = vmatprep.subr.mxu0 %v3333_v42 }
  0x17   :  { %3892 = vmatmul.mubr.msk.f32.gmra.mxu0 %vm79_vm1, %v71_v19 }
  0x18   :  { %3914 = vmatmul.mubr.msk.f32.gmra.mxu1 %vm79_vm1, %v71_v19  ;;  %3894 = vmatprep.mubr.msk.f32.mxu0 %vm79_vm1, %v72_v20 }
  0x19   :  { %3916 = vmatprep.mubr.msk.f32.mxu1 %vm79_vm1, %v72_v20 }
  0x1b   :  { %3895 = vmatmul.mubr.msk.f32.gmra.mxu0 %vm79_vm1, %v73_v21 }
  0x1c   :  { %3917 = vmatmul.mubr.msk.f32.gmra.mxu1 %vm79_vm1, %v73_v21  ;;  %3929 = vmatprep.mubr.msk.f32.mxu0 %vm79_vm1, %v46_v22 }
  0x1d   :  { %3919 = vmatprep.mubr.msk.f32.mxu1 %vm79_vm1, %v74_v3 }
  0x1f   :  { %3930 = vmatmul.mubr.msk.f32.vlgmr.msra.gmra.mxu0 %vm79_vm1, %v47_v23 }
  0x20   :  { %3920 = vmatmul.mubr.msk.f32.gmra.mxu1 %vm79_vm1, %v289_v24  ;;  %3932 = vmatprep.mubr.msk.f32.mxu0 %vm79_vm1, %v48_v25 }
  0x21   :  { %3922 = vmatprep.mubr.msk.f32.mxu1 %vm79_vm1, %v290_v26  ;;  %3976 = vmatpush3.msra.mxu0 %v3333_v42 }
  0x22   :  { %3977 = vmatprep.subr.mxu0 %v3332_v44 }
  0x23   :  { %3933 = vmatmul.mubr.msk.f32.gmra.mxu0 %vm79_vm1, %v49_v27 }
  0x24   :  { %3923 = vmatmul.mubr.msk.f32.gmra.mxu1 %vm79_vm1, %v291_v28  ;;  %3935 = vmatprep.mubr.msk.f32.mxu0 %vm79_vm1, %v50_v29 }
  0x25   :  { %3954 = vmatprep.mubr.msk.f32.mxu1 %vm79_vm1, %v48_v25  ;;  %3978 = vmatpush3.msra.mxu0 %v3332_v44  ;;  %v4463_v25 = vld [vmem:[%s5692_s3] ss:$0 sm:$0xff] }
  0x26   :  { %3979 = vmatprep.subr.mxu0 %v3331_v46 }
  0x27   :  { %3936 = vmatmul.mubr.msk.f32.gmra.mxu0 %vm79_vm1, %v51_v30 }
  0x28   :  { %3955 = vmatmul.mubr.msk.f32.vlgmr.msra.gmra.mxu1 %vm79_vm1, %v49_v27  ;;  %3938 = vmatprep.mubr.msk.f32.mxu0 %vm79_vm1, %v52_v31 }
  0x29   :  { %3957 = vmatprep.mubr.msk.f32.mxu1 %vm79_vm1, %v50_v29  ;;  %4002 = vmatpush3.msra.mxu1 %v3353_v43 }
  0x2a   :  { %4003 = vmatprep.subr.mxu1 %v3352_v45  ;;  %3980 = vmatpush3.msra.mxu0 %v3331_v46 }
  0x2b   :  { %3939 = vmatmul.mubr.msk.f32.gmra.mxu0 %vm79_vm1, %v53_v32  ;;  %4004 = vmatpush3.msra.mxu1 %v3352_v45 }
  0x2c   :  { %3958 = vmatmul.mubr.msk.f32.gmra.mxu1 %vm79_vm1, %v51_v30  ;;  %3941 = vmatprep.mubr.msk.f32.mxu0 %vm79_vm1, %v54_v33 }
  0x2d   :  { %3960 = vmatprep.mubr.msk.f32.mxu1 %vm79_vm1, %v52_v31  ;;  %3981 = vmatprep.subr.mxu0 %v3330_v47 }
  0x2e   :  { %4005 = vmatprep.subr.mxu1 %v3351_v48  ;;  %3982 = vmatpush3.msra.mxu0 %v3330_v47 }
  0x2f   :  { %3942 = vmatmul.mubr.msk.f32.gmra.mxu0 %vm79_vm1, %v55_v34  ;;  %4006 = vmatpush3.msra.mxu1 %v3351_v48 }
  0x30   :  { %3961 = vmatmul.mubr.msk.f32.gmra.mxu1 %vm79_vm1, %v53_v32  ;;  %3944 = vmatprep.mubr.msk.f32.mxu0 %vm79_vm1, %v56_v35 }
  0x31   :  { %3963 = vmatprep.mubr.msk.f32.mxu1 %vm79_vm1, %v54_v33  ;;  %4007 = vmatprep.subr.mxu1 %v3350_v49 }
  0x32   :  { %4008 = vmatpush3.msra.mxu1 %v3350_v49  ;;  %4027 = vmatprep.subr.mxu0 %v4421_v50 }
  0x33   :  { %3945 = vmatmul.mubr.msk.f32.gmra.mxu0 %vm79_vm1, %v57_v36  ;;  %4053 = vmatprep.subr.mxu1 %v4426_v51 }
  0x34   :  { %3964 = vmatmul.mubr.msk.f32.gmra.mxu1 %vm79_vm1, %v55_v34  ;;  %3947 = vmatprep.mubr.msk.f32.mxu0 %vm79_vm1, %v58_v37 }
  0x35   :  { %3966 = vmatprep.mubr.msk.f32.mxu1 %vm79_vm1, %v56_v35 }
  0x37   :  { %3948 = vmatmul.mubr.msk.f32.gmra.mxu0 %vm79_vm1, %v59_v38 }
  0x38   :  { %3967 = vmatmul.mubr.msk.f32.gmra.mxu1 %vm79_vm1, %v57_v36 }
  0x39   :  { %3969 = vmatprep.mubr.msk.f32.mxu1 %vm79_vm1, %v58_v37 }
  0x3c   :  { %3970 = vmatmul.mubr.msk.f32.gmra.mxu1 %vm79_vm1, %v272_v39 }
  0x3d   :  { %3972 = vmatprep.mubr.msk.f32.mxu1 %vm79_vm1, %v273_v40 }
  0x40   :  { %3973 = vmatmul.mubr.msk.f32.gmra.mxu1 %vm79_vm1, %v274_v41 }
  0xc7   :  { %v3881_v52 = vpop.f32.mrf.mxu0  ;;  %v4430_v53 = vpop.f32.mrf.mxu1 }
  0xc9   :  { %v192_v54 = vpop.f32.mrf.mxu0  ;;  %v4432_v55 = vpop.f32.mrf.mxu1 }
  0xcb   :  { %v3884_v56 = vpop.f32.mrf.mxu0 }
  0xcc   :  { %v3906_v57 = vpop.f32.mrf.mxu1 }
  0xcd   :  { %v202_v58 = vpop.f32.mrf.mxu0 }
  0xce   :  { %v406_v59 = vpop.f32.mrf.mxu1 }
  0xcf   :  { %v3887_v60 = vpop.f32.mrf.mxu0 }
  0xd0   :  { %v3909_v61 = vpop.f32.mrf.mxu1 }
  0xd1   :  { %v212_v62 = vpop.f32.mrf.mxu0 }
  0xd2   :  { %v416_v63 = vpop.f32.mrf.mxu1 }
  0xd3   :  { %v3890_v0 = vpop.f32.mrf.mxu0 }
  0xd4   :  { %v3912_v1 = vpop.f32.mrf.mxu1 }
  0xd5   :  { %v4434_v2 = vpop.f32.mrf.mxu0 }
  0xd6   :  { %v426_v3 = vpop.f32.mrf.mxu1 }
  0xd7   :  { %v4436_v4 = vpop.f32.mrf.mxu0 }
  0xd8   :  { %v4438_v5 = vpop.f32.mrf.mxu1 }
  0xd9   :  { %v4440_v6 = vpop.f32.mrf.mxu0 }
  0xda   :  { %v4442_v7 = vpop.f32.mrf.mxu1 }
  0xdb   :  { %v4444_v8 = vpop.f32.mrf.mxu0 }
  0xdc   :  { %v4446_v9 = vpop.f32.mrf.mxu1 }
  0xdd   :  { %v4448_v10 = vpop.f32.mrf.mxu0 }
  0xde   :  { %v4450_v11 = vpop.f32.mrf.mxu1 }
  0xdf   :  { %v3931_v12 = vpop.f32.mrf.mxu0 }
  0xe0   :  { %v4452_v13 = vpop.f32.mrf.mxu1  ;;  %v592_v22 = vadd.f32 %v3931_v12, %v3881_v52 }
  0xe1   :  { %v586_v14 = vpop.f32.mrf.mxu0 }
  0xe2   :  { %v4454_v15 = vpop.f32.mrf.mxu1  ;;  %v587_v27 = vadd.f32 %v586_v14, %v192_v54 }
  0xe3   :  { %v3934_v16 = vpop.f32.mrf.mxu0 }
  0xe4   :  { %v4456_v17 = vpop.f32.mrf.mxu1  ;;  %v602_v32 = vadd.f32 %v3934_v16, %v3884_v56 }
  0xe5   :  { %v596_v18 = vpop.f32.mrf.mxu0 }
  0xe6   :  { %v4458_v19 = vpop.f32.mrf.mxu1  ;;  %v597_v37 = vadd.f32 %v596_v18, %v202_v58 }
  0xe7   :  { %v3937_v20 = vpop.f32.mrf.mxu0 }
  0xe8   :  { %v3956_v21 = vpop.f32.mrf.mxu1  ;;  %v612_v44 = vadd.f32 %v3937_v20, %v3887_v60 }
  0xe9   :  { %v772_v23 = vadd.f32 %v3956_v21, %v3906_v57  ;;  %v606_v24 = vpop.f32.mrf.mxu0 }
  0xea   :  { %v766_v26 = vpop.f32.mrf.mxu1  ;;  %v607_v54 = vadd.f32 %v606_v24, %v212_v62 }
  0xeb   :  { %v836_v28 = vadd.f32 %v772_v23, %v592_v22  ;;  %v767_v29 = vadd.f32 %v766_v26, %v406_v59  ;;  %v3940_v30 = vpop.f32.mrf.mxu0 }
  0xec   :  { %v3959_v31 = vpop.f32.mrf.mxu1  ;;  %v622_v60 = vadd.f32 %v3940_v30, %v3890_v0 }
  0xed   :  { %v857_v33 = vadd.f32 %v4463_v25, %v836_v28  ;;  %v835_v34 = vadd.f32 %v767_v29, %v587_v27  ;;  %v782_v35 = vadd.f32 %v3959_v31, %v3909_v61  ;;  %v616_v36 = vpop.f32.mrf.mxu0 }
  0xee   :  { %v776_v38 = vpop.f32.mrf.mxu1  ;;  %v617_v62 = vadd.f32 %v616_v36, %v4434_v2 }
  0xef   :  { %v871_v39 = vmax.f32 %v857_v33, 0.0  ;;  %v856_v40 = vadd.f32 %v4463_v25, %v835_v34  ;;  %v838_v41 = vadd.f32 %v782_v35, %v602_v32  ;;  %v777_v42 = vadd.f32 %v776_v38, %v416_v63  ;;  %v3943_v43 = vpop.f32.mrf.mxu0 }
  0xf0   :  { %v3962_v45 = vpop.f32.mrf.mxu1  ;;  %v632_v24 = vadd.f32 %v3943_v43, %v4436_v4 }
  0xf1   :  { %886 = vst.msk [vmem:[#allocation2 + $0x8] sm:$0xff] %vm884_vm2, %v871_v39  ;;  %v870_v46 = vmax.f32 %v856_v40, 0.0  ;;  %v859_v47 = vadd.f32 %v4463_v25, %v838_v41  ;;  %v837_v48 = vadd.f32 %v777_v42, %v597_v37  ;;  %v792_v49 = vadd.f32 %v3962_v45, %v3912_v1  ;;  %v626_v52 = vpop.f32.mrf.mxu0 }
  0xf2   :  { %v786_v56 = vpop.f32.mrf.mxu1  ;;  %v627_v29 = vadd.f32 %v626_v52, %v4440_v6 }
  0xf3   :  { %885 = vst.msk [vmem:[#allocation2] sm:$0xff] %vm884_vm2, %v870_v46  ;;  %v873_v57 = vmax.f32 %v859_v47, 0.0  ;;  %v858_v58 = vadd.f32 %v4463_v25, %v837_v48  ;;  %v840_v59 = vadd.f32 %v792_v49, %v612_v44  ;;  %v787_v61 = vadd.f32 %v786_v56, %v426_v3  ;;  %v3946_v63 = vpop.f32.mrf.mxu0 }
  0xf4   :  { %v3965_v12 = vpop.f32.mrf.mxu1  ;;  %v642_v35 = vadd.f32 %v3946_v63, %v4444_v8 }
  0xf5   :  { %888 = vst.msk [vmem:[#allocation2 + $0x18] sm:$0xff] %vm884_vm2, %v873_v57  ;;  %v872_v14 = vmax.f32 %v858_v58, 0.0  ;;  %v861_v16 = vadd.f32 %v4463_v25, %v840_v59  ;;  %v839_v18 = vadd.f32 %v787_v61, %v607_v54  ;;  %v802_v1 = vadd.f32 %v3965_v12, %v4438_v5  ;;  %v636_v23 = vpop.f32.mrf.mxu0 }
  0xf6   :  { %v796_v20 = vpop.f32.mrf.mxu1  ;;  %v637_v39 = vadd.f32 %v636_v23, %v4448_v10 }
  0xf7   :  { %887 = vst.msk [vmem:[#allocation2 + $0x10] sm:$0xff] %vm884_vm2, %v872_v14  ;;  %v875_v21 = vmax.f32 %v861_v16, 0.0  ;;  %v860_v22 = vadd.f32 %v4463_v25, %v839_v18  ;;  %v842_v3 = vadd.f32 %v802_v1, %v622_v60  ;;  %v797_v0 = vadd.f32 %v796_v20, %v4442_v7  ;;  %v3949_v33 = vpop.f32.mrf.mxu0  ;;  %v912_v14 = vld [vmem:[%s5691_s4] sm:$0xff] }
  0xf8   :  { %v3968_v26 = vpop.f32.mrf.mxu1  ;;  %v652_v10 = vadd.f32 %v3949_v33, %v4430_v53  ;;  %v913_v53 = vld [vmem:[%s5691_s4 + $0x8] sm:$0xff] }
  0xf9   :  { %890 = vst.msk [vmem:[#allocation2 + $0x28] sm:$0xff] %vm884_vm2, %v875_v21  ;;  %v874_v27 = vmax.f32 %v860_v22, 0.0  ;;  %v863_v5 = vadd.f32 %v4463_v25, %v842_v3  ;;  %v841_v28 = vadd.f32 %v797_v0, %v617_v62  ;;  %v812_v2 = vadd.f32 %v3968_v26, %v4446_v9  ;;  %v646_v43 = vpop.f32.mrf.mxu0 }
  0xfa   :  { %v806_v30 = vpop.f32.mrf.mxu1  ;;  %v916_v31 = vld [vmem:[#allocation2 + $0x2] sm:$0xff] }
  0xfb   :  { %889 = vst.msk [vmem:[#allocation2 + $0x20] sm:$0xff] %vm884_vm2, %v874_v27  ;;  %v877_v32 = vmax.f32 %v863_v5, 0.0  ;;  %v862_v7 = vadd.f32 %v4463_v25, %v841_v28  ;;  %v844_v4 = vadd.f32 %v812_v2, %v632_v24  ;;  %v807_v34 = vadd.f32 %v806_v30, %v4450_v11  ;;  %3983 = vmatprep.mubr.msk.f32.mxu0 %vm884_vm2, %v916_v31  ;;  %v914_v11 = vld [vmem:[%s5691_s4 + $0x10] sm:$0xff]  ;;  %v900_v24 = vld [vmem:[#allocation2] sm:$0xff]  ;;  %v901_v27 = vld [vmem:[#allocation2 + $0x8] sm:$0xff] }
  0xfc   :  { %v3971_v36 = vpop.f32.mrf.mxu1  ;;  %v903_v28 = vld [vmem:[#allocation2 + $0x18] sm:$0xff] }
  0xfd   :  { %892 = vst.msk [vmem:[#allocation2 + $0x38] sm:$0xff] %vm884_vm2, %v877_v32  ;;  %v876_v9 = vmax.f32 %v862_v7, 0.0  ;;  %v865_v6 = vadd.f32 %v4463_v25, %v844_v4  ;;  %v843_v37 = vadd.f32 %v807_v34, %v627_v29  ;;  %v822_v38 = vadd.f32 %v3971_v36, %v4452_v13 }
  0xfe   :  { %v816_v40 = vpop.f32.mrf.mxu1  ;;  %v917_v41 = vld [vmem:[#allocation2 + $0xa] sm:$0xff]  ;;  %v1111_v42 = vld [vmem:[#allocation2 + $0x12] sm:$0xff] }
  0xff   :  { %891 = vst.msk [vmem:[#allocation2 + $0x30] sm:$0xff] %vm884_vm2, %v876_v9  ;;  %v879_v8 = vmax.f32 %v865_v6, 0.0  ;;  %v864_v44 = vadd.f32 %v4463_v25, %v843_v37  ;;  %v846_v45 = vadd.f32 %v822_v38, %v642_v35  ;;  %v817_v46 = vadd.f32 %v816_v40, %v4454_v15  ;;  %3984 = vmatmul.mubr.msk.f32.vlgmr.msra.gmra.mxu0 %vm884_vm2, %v917_v41  ;;  %v902_v5 = vld [vmem:[#allocation2 + $0x10] sm:$0xff]  ;;  %v1979_v9 = vld [vmem:[%s5693_s6 + $0xf8] sm:$0xff]  ;;  %v1977_v41 = vld [vmem:[%s5693_s6 + $0xe8] sm:$0xff] }
 0x100   :  { %4009 = vmatprep.mubr.msk.f32.mxu1 %vm884_vm2, %v1111_v42  ;;  %v3974_v13 = vpop.f32.mrf.mxu1  ;;  %3986 = vmatprep.mubr.msk.f32.mxu0 %vm884_vm2, %v1111_v42  ;;  %v647_v15 = vadd.f32 %v646_v43, %v4432_v55  ;;  %v3348_v55 = vld [vmem:[%s5691_s4 + $0x50] sm:$0xff]  ;;  %v905_v29 = vld [vmem:[#allocation2 + $0x28] sm:$0xff]  ;;  %v1963_v6 = vld [vmem:[%s5693_s6 + $0x78] sm:$0xff] }
 0x101   :  { %4028 = vmatpush3.msra.mxu0 %v4421_v50  ;;  %894 = vst.msk [vmem:[#allocation2 + $0x48] sm:$0xff] %vm884_vm2, %v879_v8  ;;  %v878_v47 = vmax.f32 %v864_v44, 0.0  ;;  %v867_v48 = vadd.f32 %v4463_v25, %v846_v45  ;;  %v845_v49 = vadd.f32 %v817_v46, %v637_v39  ;;  %v832_v52 = vadd.f32 %v3974_v13, %v4456_v17  ;;  %v1978_v37 = vld [vmem:[%s5693_s6 + $0xf0] sm:$0xff]  ;;  %v2011_v38 = vld [vmem:[%s5693_s6 + $0x1f8] sm:$0xff]  ;;  %v2009_v43 = vld [vmem:[%s5693_s6 + $0x1e8] sm:$0xff] }
 0x102   :  { %4029 = vmatprep.subr.mxu0 %v914_v11  ;;  %v826_v54 = vpop.f32.mrf.mxu1  ;;  %v919_v56 = vld [vmem:[#allocation2 + $0x1a] sm:$0xff]  ;;  %v920_v57 = vld [vmem:[#allocation2 + $0x22] sm:$0xff]  ;;  %v1962_v39 = vld [vmem:[%s5693_s6 + $0x70] sm:$0xff] }
 0x103   :  { %4030 = vmatpush3.msra.mxu0 %v914_v11  ;;  %893 = vst.msk [vmem:[#allocation2 + $0x40] sm:$0xff] %vm884_vm2, %v878_v47  ;;  %v881_v50 = vmax.f32 %v867_v48, 0.0  ;;  %v866_v58 = vadd.f32 %v4463_v25, %v845_v49  ;;  %v848_v59 = vadd.f32 %v832_v52, %v652_v10  ;;  %v827_v61 = vadd.f32 %v826_v54, %v4458_v19  ;;  %v904_v2 = vld [vmem:[#allocation2 + $0x20] sm:$0xff]  ;;  %v1995_v40 = vld [vmem:[%s5693_s6 + $0x178] sm:$0xff]  ;;  %v2010_v42 = vld [vmem:[%s5693_s6 + $0x1f0] sm:$0xff] }
 0x104   :  { %3987 = vmatmul.mubr.msk.f32.gmra.mxu0 %vm884_vm2, %v919_v56  ;;  %4010 = vmatmul.mubr.msk.f32.vlgmr.msra.gmra.mxu1 %vm884_vm2, %v919_v56  ;;  %v907_v31 = vld [vmem:[#allocation2 + $0x38] sm:$0xff]  ;;  %v1961_v11 = vld [vmem:[%s5693_s6 + $0x68] sm:$0xff]  ;;  %v1994_v8 = vld [vmem:[%s5693_s6 + $0x170] sm:$0xff] }
 0x105   :  { %3989 = vmatprep.mubr.msk.f32.mxu0 %vm884_vm2, %v920_v57  ;;  %4012 = vmatprep.mubr.msk.f32.mxu1 %vm884_vm2, %v920_v57  ;;  %896 = vst.msk [vmem:[#allocation2 + $0x58] sm:$0xff] %vm884_vm2, %v881_v50  ;;  %v880_v17 = vmax.f32 %v866_v58, 0.0  ;;  %v869_v63 = vadd.f32 %v4463_v25, %v848_v59  ;;  %v847_v60 = vadd.f32 %v827_v61, %v647_v15  ;;  %v1976_v44 = vld [vmem:[%s5693_s6 + $0xe0] sm:$0xff]  ;;  %v1993_v45 = vld [vmem:[%s5693_s6 + $0x168] sm:$0xff]  ;;  %v1975_v13 = vld [vmem:[%s5693_s6 + $0xd8] sm:$0xff] }
 0x106   :  { %4054 = vmatpush3.msra.mxu1 %v4426_v51  ;;  %4031 = vmatprep.subr.mxu0 %v913_v53  ;;  %v921_v19 = vld [vmem:[#allocation2 + $0x2a] sm:$0xff]  ;;  %v922_v12 = vld [vmem:[#allocation2 + $0x32] sm:$0xff]  ;;  %v1960_v46 = vld [vmem:[%s5693_s6 + $0x60] sm:$0xff] }
 0x107   :  { %4055 = vmatprep.subr.mxu1 %v3348_v55  ;;  %4032 = vmatpush3.msra.mxu0 %v913_v53  ;;  %895 = vst.msk [vmem:[#allocation2 + $0x50] sm:$0xff] %vm884_vm2, %v880_v17  ;;  %v883_v16 = vmax.f32 %v869_v63, 0.0  ;;  %v868_v18 = vadd.f32 %v4463_v25, %v847_v60  ;;  %v3347_v51 = vld [vmem:[%s5691_s4 + $0x48] sm:$0xff]  ;;  %v3346_v25 = vld [vmem:[%s5691_s4 + $0x40] sm:$0xff]  ;;  %v906_v30 = vld [vmem:[#allocation2 + $0x30] sm:$0xff] }
 0x108   :  { %3990 = vmatmul.mubr.msk.f32.gmra.mxu0 %vm884_vm2, %v921_v19  ;;  %4013 = vmatmul.mubr.msk.f32.gmra.mxu1 %vm884_vm2, %v921_v19  ;;  %v909_v7 = vld [vmem:[#allocation2 + $0x48] sm:$0xff]  ;;  %v2008_v10 = vld [vmem:[%s5693_s6 + $0x1e0] sm:$0xff]  ;;  %v1959_v48 = vld [vmem:[%s5693_s6 + $0x58] sm:$0xff] }
 0x109   :  { %3992 = vmatprep.mubr.msk.f32.mxu0 %vm884_vm2, %v922_v12  ;;  %4015 = vmatprep.mubr.msk.f32.mxu1 %vm884_vm2, %v922_v12  ;;  %899 = vst.msk [vmem:[#allocation2 + $0x68] sm:$0x3f] %vm898_vm3, %v883_v16  ;;  %v882_v1 = vmax.f32 %v868_v18, 0.0  ;;  %v1992_v47 = vld [vmem:[%s5693_s6 + $0x160] sm:$0xff]  ;;  %v2007_v49 = vld [vmem:[%s5693_s6 + $0x1d8] sm:$0xff]  ;;  %v1974_v52 = vld [vmem:[%s5693_s6 + $0xd0] sm:$0xff] }
 0x10a   :  { %4056 = vmatpush3.msra.mxu1 %v3348_v55  ;;  %4033 = vmatprep.subr.mxu0 %v912_v14  ;;  %v923_v62 = vld [vmem:[#allocation2 + $0x3a] sm:$0xff]  ;;  %v924_v20 = vld [vmem:[#allocation2 + $0x42] sm:$0xff]  ;;  %v1958_v54 = vld [vmem:[%s5693_s6 + $0x50] sm:$0xff] }
 0x10b   :  { %4057 = vmatprep.subr.mxu1 %v3347_v51  ;;  %4034 = vmatpush3.msra.mxu0 %v912_v14  ;;  %897 = vst.msk [vmem:[#allocation2 + $0x60] sm:$0xff] %vm884_vm2, %v882_v1  ;;  %v908_v32 = vld [vmem:[#allocation2 + $0x40] sm:$0xff]  ;;  %v1991_v15 = vld [vmem:[%s5693_s6 + $0x158] sm:$0xff]  ;;  %v2006_v56 = vld [vmem:[%s5693_s6 + $0x1d0] sm:$0xff] }
 0x10c   :  { %3993 = vmatmul.mubr.msk.f32.gmra.mxu0 %vm884_vm2, %v923_v62  ;;  %4016 = vmatmul.mubr.msk.f32.gmra.mxu1 %vm884_vm2, %v923_v62  ;;  %v927_v3 = vld [vmem:[#allocation2 + $0x5a] sm:$0xf]  ;;  %v1973_v57 = vld [vmem:[%s5693_s6 + $0xc8] sm:$0xff]  ;;  %v1990_v53 = vld [vmem:[%s5693_s6 + $0x150] sm:$0xff] }
 0x10d   :  { %3995 = vmatprep.mubr.msk.f32.mxu0 %vm884_vm2, %v924_v20  ;;  %4018 = vmatprep.mubr.msk.f32.mxu1 %vm884_vm2, %v924_v20  ;;  %v911_v4 = vld [vmem:[#allocation2 + $0x58] sm:$0xf]  ;;  %v1957_v50 = vld [vmem:[%s5693_s6 + $0x48] sm:$0xff] }
 0x10e   :  { %4058 = vmatpush3.msra.mxu1 %v3347_v51  ;;  %v925_v21 = vld [vmem:[#allocation2 + $0x4a] sm:$0xff]  ;;  %v926_v22 = vld [vmem:[#allocation2 + $0x52] sm:$0xff]  ;;  %3547 = vmatprep.subr.mxu0 %v1979_v9  ;;  %v1972_v9 = vld [vmem:[%s5693_s6 + $0xc0] sm:$0xff] }
 0x10f   :  { %4059 = vmatprep.subr.mxu1 %v3346_v25  ;;  %v910_v33 = vld [vmem:[#allocation2 + $0x50] sm:$0xff]  ;;  %v1103_v34 = vld [vmem:[#allocation2 + $0x58] sm:$0xff] }
 0x110   :  { %3996 = vmatmul.mubr.msk.f32.gmra.mxu0 %vm884_vm2, %v925_v21  ;;  %4019 = vmatmul.mubr.msk.f32.gmra.mxu1 %vm884_vm2, %v925_v21  ;;  %v1122_v26 = vld [vmem:[#allocation2 + $0x6a] sm:$0xf] }
 0x111   :  { %3998 = vmatprep.mubr.msk.f32.mxu0 %vm884_vm2, %v926_v22  ;;  %4021 = vmatprep.mubr.msk.f32.mxu1 %vm884_vm2, %v926_v22  ;;  %v1105_v36 = vld [vmem:[#allocation2 + $0x68] sm:$0xf] }
 0x112   :  { %4060 = vmatpush3.msra.mxu1 %v3346_v25  ;;  %v1120_v23 = vld [vmem:[#allocation2 + $0x5a] sm:$0xff]  ;;  %v1121_v0 = vld [vmem:[#allocation2 + $0x62] sm:$0xff] }
 0x113   :  { %v1104_v35 = vld [vmem:[#allocation2 + $0x60] sm:$0xff]  ;;  %3582 = vmatprep.subr.mxu1 %v2011_v38 }
 0x114   :  { %3999 = vmatmul.mubr.msk.f32.gmra.mxu0 %vm884_vm2, %v927_v3  ;;  %4022 = vmatmul.mubr.msk.f32.gmra.mxu1 %vm884_vm2, %v1120_v23 }
 0x115   :  { %4024 = vmatprep.mubr.msk.f32.mxu1 %vm884_vm2, %v1121_v0  ;;  %4035 = vmatprep.mubr.msk.f32.mxu0 %vm884_vm2, %v900_v24 }
 0x118   :  { %4025 = vmatmul.mubr.msk.f32.gmra.mxu1 %vm884_vm2, %v1122_v26  ;;  %4036 = vmatmul.mubr.msk.f32.vlgmr.msra.gmra.mxu0 %vm884_vm2, %v901_v27 }
 0x119   :  { %4038 = vmatprep.mubr.msk.f32.mxu0 %vm884_vm2, %v902_v5  ;;  %4061 = vmatprep.mubr.msk.f32.mxu1 %vm884_vm2, %v902_v5 }
 0x11a   :  { %3548 = vmatpush3.msra.mxu0 %v1963_v6  ;;  %v2005_v6 = vld [vmem:[%s5693_s6 + $0x1c8] sm:$0xff] }
 0x11b   :  { %3549 = vmatprep.subr.mxu0 %v1978_v37  ;;  %v1956_v37 = vld [vmem:[%s5693_s6 + $0x40] sm:$0xff] }
 0x11c   :  { %4039 = vmatmul.mubr.msk.f32.gmra.mxu0 %vm884_vm2, %v903_v28  ;;  %4062 = vmatmul.mubr.msk.f32.vlgmr.msra.gmra.mxu1 %vm884_vm2, %v903_v28 }
 0x11d   :  { %4041 = vmatprep.mubr.msk.f32.mxu0 %vm884_vm2, %v904_v2  ;;  %4064 = vmatprep.mubr.msk.f32.mxu1 %vm884_vm2, %v904_v2 }
 0x11e   :  { %3583 = vmatpush3.msra.mxu1 %v1995_v40  ;;  %3550 = vmatpush3.msra.mxu0 %v1962_v39 }
 0x11f   :  { %3584 = vmatprep.subr.mxu1 %v2010_v42  ;;  %3551 = vmatprep.subr.mxu0 %v1977_v41  ;;  %v1989_v42 = vld [vmem:[%s5693_s6 + $0x148] sm:$0xff] }
 0x120   :  { %4042 = vmatmul.mubr.msk.f32.gmra.mxu0 %vm884_vm2, %v905_v29  ;;  %4065 = vmatmul.mubr.msk.f32.gmra.mxu1 %vm884_vm2, %v905_v29 }
 0x121   :  { %4044 = vmatprep.mubr.msk.f32.mxu0 %vm884_vm2, %v906_v30  ;;  %4067 = vmatprep.mubr.msk.f32.mxu1 %vm884_vm2, %v906_v30 }
 0x122   :  { %3585 = vmatpush3.msra.mxu1 %v1994_v8  ;;  %3552 = vmatpush3.msra.mxu0 %v1961_v11 }
 0x123   :  { %3586 = vmatprep.subr.mxu1 %v2009_v43  ;;  %3553 = vmatprep.subr.mxu0 %v1976_v44  ;;  %v1971_v43 = vld [vmem:[%s5693_s6 + $0xb8] sm:$0xff]  ;;  %v2004_v44 = vld [vmem:[%s5693_s6 + $0x1c0] sm:$0xff] }
 0x124   :  { %4045 = vmatmul.mubr.msk.f32.gmra.mxu0 %vm884_vm2, %v907_v31  ;;  %4068 = vmatmul.mubr.msk.f32.gmra.mxu1 %vm884_vm2, %v907_v31  ;;  %v4688_v31 = vld [vmem:[%s5694_s5] ss:$0 sm:$0xff] }
 0x125   :  { %4047 = vmatprep.mubr.msk.f32.mxu0 %vm884_vm2, %v908_v32  ;;  %4070 = vmatprep.mubr.msk.f32.mxu1 %vm884_vm2, %v908_v32 }
 0x126   :  { %3587 = vmatpush3.msra.mxu1 %v1993_v45  ;;  %3554 = vmatpush3.msra.mxu0 %v1960_v46  ;;  %v1955_v45 = vld [vmem:[%s5693_s6 + $0x38] sm:$0xff] }
 0x127   :  { %3588 = vmatprep.subr.mxu1 %v2008_v10  ;;  %3555 = vmatprep.subr.mxu0 %v1975_v13 }
 0x128   :  { %4048 = vmatmul.mubr.msk.f32.gmra.mxu0 %vm884_vm2, %v909_v7  ;;  %4071 = vmatmul.mubr.msk.f32.gmra.mxu1 %vm884_vm2, %v909_v7 }
 0x129   :  { %4050 = vmatprep.mubr.msk.f32.mxu0 %vm884_vm2, %v910_v33  ;;  %4073 = vmatprep.mubr.msk.f32.mxu1 %vm884_vm2, %v910_v33 }
 0x12a   :  { %3589 = vmatpush3.msra.mxu1 %v1992_v47  ;;  %3556 = vmatpush3.msra.mxu0 %v1959_v48  ;;  %v1988_v47 = vld [vmem:[%s5693_s6 + $0x140] sm:$0xff]  ;;  %v1970_v48 = vld [vmem:[%s5693_s6 + $0xb0] sm:$0xff] }
 0x12b   :  { %3590 = vmatprep.subr.mxu1 %v2007_v49  ;;  %3557 = vmatprep.subr.mxu0 %v1974_v52  ;;  %v2003_v49 = vld [vmem:[%s5693_s6 + $0x1b8] sm:$0xff] }
 0x12c   :  { %4051 = vmatmul.mubr.msk.f32.gmra.mxu0 %vm884_vm2, %v911_v4  ;;  %4074 = vmatmul.mubr.msk.f32.gmra.mxu1 %vm884_vm2, %v1103_v34 }
 0x12d   :  { %4076 = vmatprep.mubr.msk.f32.mxu1 %vm884_vm2, %v1104_v35  ;;  %3591 = vmatpush3.msra.mxu1 %v1991_v15 }
 0x12e   :  { %3558 = vmatpush3.msra.mxu0 %v1958_v54  ;;  %3592 = vmatprep.subr.mxu1 %v2006_v56 }
 0x12f   :  { %3559 = vmatprep.subr.mxu0 %v1973_v57  ;;  %3593 = vmatpush3.msra.mxu1 %v1990_v53  ;;  %v1954_v57 = vld [vmem:[%s5693_s6 + $0x30] sm:$0xff]  ;;  %v1987_v53 = vld [vmem:[%s5693_s6 + $0x138] sm:$0xff] }
 0x130   :  { %4077 = vmatmul.mubr.msk.f32.gmra.mxu1 %vm884_vm2, %v1105_v36  ;;  %3560 = vmatpush3.msra.mxu0 %v1957_v50 }
 0x131   :  { %3561 = vmatprep.subr.mxu0 %v1972_v9  ;;  %3594 = vmatprep.subr.mxu1 %v2005_v6 }
 0x132   :  { %3562 = vmatpush3.msra.mxu0 %v1956_v37  ;;  %3595 = vmatpush3.msra.mxu1 %v1989_v42 }
 0x133   :  { %3563 = vmatprep.subr.mxu0 %v1971_v43  ;;  %3596 = vmatprep.subr.mxu1 %v2004_v44 }
 0x134   :  { %3564 = vmatpush3.msra.mxu0 %v1955_v45  ;;  %3597 = vmatpush3.msra.mxu1 %v1988_v47 }
 0x135   :  { %3565 = vmatprep.subr.mxu0 %v1970_v48  ;;  %3598 = vmatprep.subr.mxu1 %v2003_v49 }
 0x136   :  { %3566 = vmatpush3.msra.mxu0 %v1954_v57  ;;  %3599 = vmatpush3.msra.mxu1 %v1987_v53 }
 0x1bf   :  { %v3985_v58 = vpop.f32.mrf.mxu0 }
 0x1c1   :  { %v1035_v59 = vpop.f32.mrf.mxu0 }
 0x1c4   :  { %v3988_v61 = vpop.f32.mrf.mxu0  ;;  %v4011_v55 = vpop.f32.mrf.mxu1 }
 0x1c6   :  { %v1045_v17 = vpop.f32.mrf.mxu0  ;;  %v1230_v63 = vpop.f32.mrf.mxu1 }
 0x1c8   :  { %v4653_v60 = vpop.f32.mrf.mxu0  ;;  %v4014_v19 = vpop.f32.mrf.mxu1 }
 0x1ca   :  { %v4655_v12 = vpop.f32.mrf.mxu0  ;;  %v1240_v14 = vpop.f32.mrf.mxu1 }
 0x1cc   :  { %v4657_v16 = vpop.f32.mrf.mxu0  ;;  %v4659_v18 = vpop.f32.mrf.mxu1 }
 0x1ce   :  { %v4661_v51 = vpop.f32.mrf.mxu0  ;;  %v4663_v1 = vpop.f32.mrf.mxu1 }
 0x1d0   :  { %v4665_v62 = vpop.f32.mrf.mxu0  ;;  %v4667_v20 = vpop.f32.mrf.mxu1 }
 0x1d2   :  { %v4669_v25 = vpop.f32.mrf.mxu0  ;;  %v4671_v21 = vpop.f32.mrf.mxu1 }
 0x1d4   :  { %v4673_v22 = vpop.f32.mrf.mxu0  ;;  %v4675_v3 = vpop.f32.mrf.mxu1 }
 0x1d6   :  { %v4677_v23 = vpop.f32.mrf.mxu0  ;;  %v4679_v0 = vpop.f32.mrf.mxu1 }
 0x1d8   :  { %v4681_v24 = vpop.f32.mrf.mxu1  ;;  %v4037_v26 = vpop.f32.mrf.mxu0 }
 0x1d9   :  { %v1397_v29 = vadd.f32 %v4037_v26, %v3985_v58 }
 0x1da   :  { %v4683_v27 = vpop.f32.mrf.mxu1  ;;  %v1391_v5 = vpop.f32.mrf.mxu0 }
 0x1db   :  { %v1392_v33 = vadd.f32 %v1391_v5, %v1035_v59 }
 0x1dc   :  { %v4040_v28 = vpop.f32.mrf.mxu0  ;;  %v4063_v2 = vpop.f32.mrf.mxu1 }
 0x1dd   :  { %v1558_v30 = vadd.f32 %v4063_v2, %v4011_v55  ;;  %v1407_v38 = vadd.f32 %v4040_v28, %v3988_v61  ;;  %v1953_v28 = vld [vmem:[%s5693_s6 + $0x28] sm:$0xff] }
 0x1de   :  { %v1401_v32 = vpop.f32.mrf.mxu0  ;;  %v1552_v7 = vpop.f32.mrf.mxu1 }
 0x1df   :  { %v1612_v4 = vadd.f32 %v1558_v30, %v1397_v29  ;;  %v1553_v34 = vadd.f32 %v1552_v7, %v1230_v63  ;;  %v1402_v52 = vadd.f32 %v1401_v32, %v1045_v17  ;;  %v1968_v30 = vld [vmem:[%s5693_s6 + $0xa0] sm:$0xff]  ;;  %v2001_v32 = vld [vmem:[%s5693_s6 + $0x1a8] sm:$0xff] }
 0x1e0   :  { %v4043_v35 = vpop.f32.mrf.mxu0  ;;  %v4066_v36 = vpop.f32.mrf.mxu1 }
 0x1e1   :  { %v1631_v39 = vadd.f32 %v4688_v31, %v1612_v4  ;;  %v1611_v40 = vadd.f32 %v1553_v34, %v1392_v33  ;;  %v1568_v41 = vadd.f32 %v4066_v36, %v4014_v19  ;;  %v1417_v58 = vadd.f32 %v4043_v35, %v4653_v60  ;;  %v1969_v60 = vld [vmem:[%s5693_s6 + $0xa8] sm:$0xff]  ;;  %v1952_v35 = vld [vmem:[%s5693_s6 + $0x20] sm:$0xff] }
 0x1e2   :  { %v1411_v11 = vpop.f32.mrf.mxu0  ;;  %v1562_v8 = vpop.f32.mrf.mxu1  ;;  %3567 = vmatprep.subr.mxu0 %v1969_v60  ;;  %v1985_v36 = vld [vmem:[%s5693_s6 + $0x128] sm:$0xff] }
 0x1e3   :  { %v1643_v46 = vmax.f32 %v1631_v39, 0.0  ;;  %v1630_v10 = vadd.f32 %v4688_v31, %v1611_v40  ;;  %v1614_v13 = vadd.f32 %v1568_v41, %v1407_v38  ;;  %v1563_v15 = vadd.f32 %v1562_v8, %v1240_v14  ;;  %3568 = vmatpush3.msra.mxu0 %v1953_v28  ;;  %v2000_v40 = vld [vmem:[%s5693_s6 + $0x1a0] sm:$0xff]  ;;  %v1951_v41 = vld [vmem:[%s5693_s6 + $0x18] sm:$0xff]  ;;  %v1982_v28 = vld [vmem:[%s5693_s6 + $0x110] sm:$0xff] }
 0x1e4   :  { %v4046_v54 = vpop.f32.mrf.mxu0  ;;  %v4069_v56 = vpop.f32.mrf.mxu1  ;;  %v1412_v14 = vadd.f32 %v1411_v11, %v4655_v12  ;;  %3569 = vmatprep.subr.mxu0 %v1968_v30  ;;  %v1964_v30 = vld [vmem:[%s5693_s6 + $0x80] sm:$0xff] }
 0x1e5   :  { %1656 = vst.msk [vmem:[#allocation3 + $0x8] sm:$0xff] %vm1654_vm4, %v1643_v46  ;;  %v1642_v50 = vmax.f32 %v1630_v10, 0.0  ;;  %v1633_v59 = vadd.f32 %v4688_v31, %v1614_v13  ;;  %v1578_v61 = vadd.f32 %v4069_v56, %v4659_v18  ;;  %v1613_v55 = vadd.f32 %v1563_v15, %v1402_v52  ;;  %v2002_v18 = vld [vmem:[%s5693_s6 + $0x1b0] sm:$0xff]  ;;  %3570 = vmatpush3.msra.mxu0 %v1952_v35 }
 0x1e6   :  { %v1421_v17 = vpop.f32.mrf.mxu0  ;;  %v1572_v63 = vpop.f32.mrf.mxu1  ;;  %3600 = vmatprep.subr.mxu1 %v2002_v18  ;;  %v1427_v7 = vadd.f32 %v4046_v54, %v4657_v16  ;;  %v1949_v18 = vld [vmem:[%s5693_s6 + $0x8] sm:$0xff] }
 0x1e7   :  { %1655 = vst.msk [vmem:[#allocation3] sm:$0xff] %vm1654_vm4, %v1642_v50  ;;  %v1645_v19 = vmax.f32 %v1633_v59, 0.0  ;;  %v1616_v26 = vadd.f32 %v1578_v61, %v1417_v58  ;;  %v1573_v5 = vadd.f32 %v1572_v63, %v4663_v1  ;;  %v1632_v2 = vadd.f32 %v4688_v31, %v1613_v55  ;;  %v1986_v1 = vld [vmem:[%s5693_s6 + $0x130] sm:$0xff] }
 0x1e8   :  { %v4049_v29 = vpop.f32.mrf.mxu0  ;;  %v4072_v12 = vpop.f32.mrf.mxu1  ;;  %3601 = vmatpush3.msra.mxu1 %v1986_v1  ;;  %v1422_v42 = vadd.f32 %v1421_v17, %v4661_v51  ;;  %v1984_v51 = vld [vmem:[%s5693_s6 + $0x120] sm:$0xff]  ;;  %v1950_v50 = vld [vmem:[%s5693_s6 + $0x10] sm:$0xff] }
 0x1e9   :  { %1658 = vst.msk [vmem:[#allocation3 + $0x18] sm:$0xff] %vm1654_vm4, %v1645_v19  ;;  %v1635_v33 = vadd.f32 %v4688_v31, %v1616_v26  ;;  %v1615_v4 = vadd.f32 %v1573_v5, %v1412_v14  ;;  %v1588_v34 = vadd.f32 %v4072_v12, %v4667_v20  ;;  %v1644_v9 = vmax.f32 %v1632_v2, 0.0  ;;  %3602 = vmatprep.subr.mxu1 %v2001_v32  ;;  %v1967_v20 = vld [vmem:[%s5693_s6 + $0x98] sm:$0xff]  ;;  %v1965_v26 = vld [vmem:[%s5693_s6 + $0x88] sm:$0xff] }
 0x1ea   :  { %v1431_v6 = vpop.f32.mrf.mxu0  ;;  %v1582_v37 = vpop.f32.mrf.mxu1  ;;  %3603 = vmatpush3.msra.mxu1 %v1985_v36  ;;  %3571 = vmatprep.subr.mxu0 %v1967_v20  ;;  %v1437_v10 = vadd.f32 %v4049_v29, %v4665_v62  ;;  %v1999_v62 = vld [vmem:[%s5693_s6 + $0x198] sm:$0xff]  ;;  %v1981_v20 = vld [vmem:[%s5693_s6 + $0x108] sm:$0xff] }
 0x1eb   :  { %v1647_v16 = vmax.f32 %v1635_v33, 0.0  ;;  %v1634_v38 = vadd.f32 %v4688_v31, %v1615_v4  ;;  %v1618_v39 = vadd.f32 %v1588_v34, %v1427_v7  ;;  %1657 = vst.msk [vmem:[#allocation3 + $0x10] sm:$0xff] %vm1654_vm4, %v1644_v9  ;;  %v1583_v11 = vadd.f32 %v1582_v37, %v4671_v21  ;;  %3604 = vmatprep.subr.mxu1 %v2000_v40  ;;  %v1966_v21 = vld [vmem:[%s5693_s6 + $0x90] sm:$0xff]  ;;  %v1983_v14 = vld [vmem:[%s5693_s6 + $0x118] sm:$0xff]  ;;  %v1997_v4 = vld [vmem:[%s5693_s6 + $0x188] sm:$0xff] }
 0x1ec   :  { %v4052_v8 = vpop.f32.mrf.mxu0  ;;  %v4075_v43 = vpop.f32.mrf.mxu1  ;;  %v3393_v44 = vld.sshfl [vmem:[#allocation3 + $0xa] sm:$0x3 pattern:$0x76325410]  ;;  %v1700_v45 = vld [vmem:[#allocation3 + $0x8] sm:$0x3]  ;;  %3572 = vmatpush3.msra.mxu0 %v1951_v41  ;;  %3605 = vmatpush3.msra.mxu1 %v1984_v51  ;;  %v1432_v54 = vadd.f32 %v1431_v6, %v4669_v25 }
 0x1ed   :  { %1660 = vst.msk [vmem:[#allocation3 + $0x28] sm:$0xff] %vm1654_vm4, %v1647_v16  ;;  %v1646_v46 = vmax.f32 %v1634_v38, 0.0  ;;  %v1637_v13 = vadd.f32 %v4688_v31, %v1618_v39  ;;  %v1598_v47 = vadd.f32 %v4075_v43, %v4675_v3  ;;  %1711 = vrot.lane.b32.xlu1 %v3393_v44, %s4126_s16  ;;  %v1617_v48 = vadd.f32 %v1583_v11, %v1422_v42  ;;  %v1948_v37 = vld [vmem:[%s5693_s6] sm:$0xff]  ;;  %v2043_v42 = vld [vmem:[%s5693_s6 + $0x2f8] sm:$0xff] }
 0x1ee   :  { %1701 = vst.msk [vmem:[#allocation4 + $0x4] sm:$0x3] %vm1669_vm5, %v1700_v45  ;;  %v1592_v3 = vpop.f32.mrf.mxu1  ;;  %v3391_v49 = vld.sshfl [vmem:[#allocation3 + $0x2] sm:$0x3 pattern:$0x76325410]  ;;  %v1441_v57 = vpop.f32.mrf.mxu0  ;;  %3573 = vmatprep.subr.mxu0 %v1966_v21  ;;  %3606 = vmatprep.subr.mxu1 %v1999_v62  ;;  %v1447_v25 = vadd.f32 %v4052_v8, %v4673_v22 }
 0x1ef   :  { %v1668_v52 = vld [vmem:[#allocation3] sm:$0x3]  ;;  %1659 = vst.msk [vmem:[#allocation3 + $0x20] sm:$0xff] %vm1654_vm4, %v1646_v46  ;;  %v1649_v15 = vmax.f32 %v1637_v13, 0.0  ;;  %v1620_v56 = vadd.f32 %v1598_v47, %v1437_v10  ;;  %v1593_v53 = vadd.f32 %v1592_v3, %v4679_v0  ;;  %1680 = vrot.lane.b32.xlu0 %v3391_v49, %s4126_s16  ;;  %v1636_v58 = vadd.f32 %v4688_v31, %v1617_v48  ;;  %v1685_v55 = vld [vmem:[#allocation3 + $0x4] sm:$0x3] }
 0x1f0   :  { %1670 = vst.msk [vmem:[#allocation4] sm:$0x3] %vm1669_vm5, %v1668_v52  ;;  %v4078_v59 = vpop.f32.mrf.mxu1  ;;  %v3392_v61 = vld.sshfl [vmem:[#allocation3 + $0x6] sm:$0x3 pattern:$0x76325410]  ;;  %3574 = vmatpush3.msra.mxu0 %v1950_v50  ;;  %v1442_v60 = vadd.f32 %v1441_v57, %v4677_v23  ;;  %3607 = vmatpush3.msra.mxu1 %v1983_v14 }
 0x1f1   :  { %1662 = vst.msk [vmem:[#allocation3 + $0x38] sm:$0xff] %vm1654_vm4, %v1649_v15  ;;  %v1639_v0 = vadd.f32 %v4688_v31, %v1620_v56  ;;  %v1619_v17 = vadd.f32 %v1593_v53, %v1432_v54  ;;  %v1608_v63 = vadd.f32 %v4078_v59, %v4681_v24  ;;  %v1745_v19 = vld [vmem:[#allocation3 + $0x18] sm:$0x3]  ;;  %v1648_v5 = vmax.f32 %v1636_v58, 0.0  ;;  %3575 = vmatprep.subr.mxu0 %v1965_v26  ;;  %v1998_v24 = vld [vmem:[%s5693_s6 + $0x190] sm:$0xff]  ;;  %v1996_v41 = vld [vmem:[%s5693_s6 + $0x180] sm:$0xff] }
 0x1f2   :  { %1686 = vst.msk [vmem:[#allocation4 + $0x2] sm:$0x3] %vm1669_vm5, %v1685_v55  ;;  %v1602_v22 = vpop.f32.mrf.mxu1  ;;  %1746 = vst.msk [vmem:[#allocation4 + $0xa] sm:$0x3] %vm1669_vm5, %v1745_v19  ;;  %3608 = vmatprep.subr.mxu1 %v1998_v24  ;;  %v1715_v32 = vld [vmem:[#allocation3 + $0x10] sm:$0x3]  ;;  %3576 = vmatpush3.msra.mxu0 %v1949_v18 }
 0x1f3   :  { %v1651_v2 = vmax.f32 %v1639_v0, 0.0  ;;  %v1638_v23 = vadd.f32 %v4688_v31, %v1619_v17  ;;  %v1622_v29 = vadd.f32 %v1608_v63, %v1447_v25  ;;  %v1603_v12 = vadd.f32 %v1602_v22, %v4683_v27  ;;  %v3394_v1 = vld.sshfl [vmem:[#allocation3 + $0x12] sm:$0x3 pattern:$0x76325410]  ;;  %1696 = vrot.lane.b32.xlu0 %v3392_v61, %s4126_s16  ;;  %1661 = vst.msk [vmem:[#allocation3 + $0x30] sm:$0xff] %vm1654_vm4, %v1648_v5 }
 0x1f4   :  { %1726 = vrot.lane.b32.xlu1 %v3394_v1, %s4126_s16  ;;  %1716 = vst.msk [vmem:[#allocation4 + $0x6] sm:$0x3] %vm1669_vm5, %v1715_v32  ;;  %3609 = vmatpush3.msra.mxu1 %v1982_v28  ;;  %v3395_v34 = vld.sshfl [vmem:[#allocation3 + $0x16] sm:$0x3 pattern:$0x76325410]  ;;  %v2253_v0 = vlaneseq }
 0x1f5   :  { %1664 = vst.msk [vmem:[#allocation3 + $0x48] sm:$0xff] %vm1654_vm4, %v1651_v2  ;;  %v1650_v7 = vmax.f32 %v1638_v23, 0.0  ;;  %v1641_v33 = vadd.f32 %v4688_v31, %v1622_v29  ;;  %v1621_v27 = vadd.f32 %v1603_v12, %v1442_v60  ;;  %3577 = vmatprep.subr.mxu0 %v1964_v30  ;;  %v1730_v35 = vld [vmem:[#allocation3 + $0x14] sm:$0x3]  ;;  %3610 = vmatprep.subr.mxu1 %v1997_v4  ;;  %v1790_v40 = vld [vmem:[#allocation3 + $0x28] sm:$0x3] }
 0x1f6   :  { %v3396_v6 = vld.sshfl [vmem:[#allocation3 + $0x1a] sm:$0x3 pattern:$0x76325410]  ;;  %1731 = vst.msk [vmem:[#allocation4 + $0x8] sm:$0x3] %vm1669_vm5, %v1730_v35  ;;  %3578 = vmatpush3.msra.mxu0 %v1948_v37  ;;  %3611 = vmatpush3.msra.mxu1 %v1981_v20 }
 0x1f7   :  { %1663 = vst.msk [vmem:[#allocation3 + $0x40] sm:$0xff] %vm1654_vm4, %v1650_v7  ;;  %v1653_v36 = vmax.f32 %v1641_v33, 0.0  ;;  %v1640_v9 = vadd.f32 %v4688_v31, %v1621_v27  ;;  %1741 = vrot.lane.b32.xlu0 %v3395_v34, %s4126_s16  ;;  %v3397_v16 = vld.sshfl [vmem:[#allocation3 + $0x22] sm:$0x3 pattern:$0x76325410]  ;;  %3612 = vmatprep.subr.mxu1 %v1996_v41 }
 0x1f8   :  { %1756 = vrot.lane.b32.xlu1 %v3396_v6, %s4126_s16  ;;  %v1775_v38 = vld [vmem:[#allocation3 + $0x24] sm:$0x3]  ;;  %v1760_v31 = vld [vmem:[#allocation3 + $0x20] sm:$0x3]  ;;  %1791 = vst.msk [vmem:[#allocation4 + $0x10] sm:$0x3] %vm1669_vm5, %v1790_v40  ;;  %3617 = vmatprep.subr.mxu0 %v2043_v42 }
 0x1f9   :  { %1667 = vst.msk [vmem:[#allocation3 + $0x58] sm:$0xf] %vm1666_vm6, %v1653_v36  ;;  %v1652_v39 = vmax.f32 %v1640_v9, 0.0  ;;  %v1980_v11 = vld [vmem:[%s5693_s6 + $0x100] sm:$0xff]  ;;  %v2075_v44 = vld [vmem:[%s5693_s6 + $0x3f8] sm:$0xff]  ;;  %v2254_v14 = vshrl.u32 %v2253_v0, 7 }
 0x1fa   :  { %1776 = vst.msk [vmem:[#allocation4 + $0xe] sm:$0x3] %vm1669_vm5, %v1775_v38  ;;  %1761 = vst.msk [vmem:[#allocation4 + $0xc] sm:$0x3] %vm1669_vm5, %v1760_v31  ;;  %v1805_v43 = vld [vmem:[#allocation3 + $0x30] sm:$0x3]  ;;  %3613 = vmatpush3.msra.mxu1 %v1980_v11 }
 0x1fb   :  { %1665 = vst.msk [vmem:[#allocation3 + $0x50] sm:$0xff] %vm1654_vm4, %v1652_v39  ;;  %v3398_v8 = vld.sshfl [vmem:[#allocation3 + $0x26] sm:$0x3 pattern:$0x76325410]  ;;  %1771 = vrot.lane.b32.xlu0 %v3397_v16, %s4126_s16  ;;  %3652 = vmatprep.subr.mxu1 %v2075_v44  ;;  %v2027_v30 = vld [vmem:[%s5693_s6 + $0x278] sm:$0xff] }
 0x1fc   :  { %1786 = vrot.lane.b32.xlu1 %v3398_v8, %s4126_s16  ;;  %1806 = vst.msk [vmem:[#allocation4 + $0x12] sm:$0x3] %vm1669_vm5, %v1805_v43  ;;  %v3399_v45 = vld.sshfl [vmem:[#allocation3 + $0x2a] sm:$0x3 pattern:$0x76325410] }
 0x1fd   :  { %v1835_v46 = vld [vmem:[#allocation3 + $0x38] sm:$0x3]  ;;  %v3400_v10 = vld.sshfl [vmem:[#allocation3 + $0x32] sm:$0x3 pattern:$0x76325410] }
 0x1fe   :  { %1836 = vst.msk [vmem:[#allocation4 + $0x16] sm:$0x3] %vm1669_vm5, %v1835_v46  ;;  %v1820_v13 = vld [vmem:[#allocation3 + $0x34] sm:$0x3]  ;;  %v1865_v21 = vld [vmem:[#allocation3 + $0x44] sm:$0x3] }
 0x1ff   :  { %1801 = vrot.lane.b32.xlu0 %v3399_v45, %s4126_s16  ;;  %1821 = vst.msk [vmem:[#allocation4 + $0x14] sm:$0x3] %vm1669_vm5, %v1820_v13  ;;  %v3401_v47 = vld.sshfl [vmem:[#allocation3 + $0x36] sm:$0x3 pattern:$0x76325410] }
 0x200   :  { %1816 = vrot.lane.b32.xlu1 %v3400_v10, %s4126_s16  ;;  %v3402_v51 = vld.sshfl [vmem:[#allocation3 + $0x3a] sm:$0x3 pattern:$0x76325410]  ;;  %1866 = vst.msk [vmem:[#allocation4 + $0x1a] sm:$0x3] %vm1669_vm5, %v1865_v21 }
 0x201   :  { %v1850_v62 = vld [vmem:[#allocation3 + $0x40] sm:$0x3]  ;;  %v3404_v48 = vld.sshfl [vmem:[#allocation3 + $0x46] sm:$0x3 pattern:$0x76325410] }
 0x202   :  { %1851 = vst.msk [vmem:[#allocation4 + $0x18] sm:$0x3] %vm1669_vm5, %v1850_v62  ;;  %v3403_v3 = vld.sshfl [vmem:[#allocation3 + $0x42] sm:$0x3 pattern:$0x76325410] }
 0x203   :  { %1831 = vrot.lane.b32.xlu0 %v3401_v47, %s4126_s16  ;;  %v1895_v49 = vld [vmem:[#allocation3 + $0x50] sm:$0x3]  ;;  %v1880_v52 = vld [vmem:[#allocation3 + $0x48] sm:$0x3]  ;;  %v1925_v54 = vld [vmem:[#allocation3 + $0x58] sm:$0x3] }
 0x204   :  { %1846 = vrot.lane.b32.xlu1 %v3402_v51, %s4126_s16  ;;  %1896 = vst.msk [vmem:[#allocation4 + $0x1e] sm:$0x3] %vm1669_vm5, %v1895_v49  ;;  %1881 = vst.msk [vmem:[#allocation4 + $0x1c] sm:$0x3] %vm1669_vm5, %v1880_v52  ;;  %v1910_v56 = vld [vmem:[#allocation3 + $0x54] sm:$0x3] }
 0x205   :  { %v3405_v15 = vld.sshfl [vmem:[#allocation3 + $0x4a] sm:$0x3 pattern:$0x76325410]  ;;  %1926 = vst.msk [vmem:[#allocation4 + $0x22] sm:$0x3] %vm1669_vm5, %v1925_v54 }
 0x206   :  { %v3406_v57 = vld.sshfl [vmem:[#allocation3 + $0x52] sm:$0x3 pattern:$0x76325410]  ;;  %1911 = vst.msk [vmem:[#allocation4 + $0x20] sm:$0x3] %vm1669_vm5, %v1910_v56 }
 0x207   :  { %1861 = vrot.lane.b32.xlu0 %v3403_v3, %s4126_s16  ;;  %v3407_v53 = vld.sshfl [vmem:[#allocation3 + $0x56] sm:$0x3 pattern:$0x76325410]  ;;  %v1940_v58 = vld [vmem:[%s5695_s1] sm:$0x3] }
 0x208   :  { %1876 = vrot.lane.b32.xlu1 %v3404_v48, %s4126_s16  ;;  %v3408_v50 = vld.sshfl [vmem:[#allocation3 + $0x5a] sm:$0x3 pattern:$0x76325410]  ;;  %1942 = vst.msk [vmem:[#allocation4 + $0x24] sm:$0x3] %vm1941_vm7, %v1940_v58 }
 0x209   :  { %v4127_v55 = vmov 1983009808   ;;  %v2042_v7 = vld [vmem:[%s5693_s6 + $0x2f0] sm:$0xff]  ;;  %v2059_v27 = vld [vmem:[%s5693_s6 + $0x378] sm:$0xff]  ;;  %v2041_v34 = vld [vmem:[%s5693_s6 + $0x2e8] sm:$0xff] }
 0x20a   :  { %v2251_v25 = vunpack.c.l.s4 %v4127_v55  ;;  %v2026_v33 = vld [vmem:[%s5693_s6 + $0x270] sm:$0xff]  ;;  %v2025_v9 = vld [vmem:[%s5693_s6 + $0x268] sm:$0xff]  ;;  %v2040_v16 = vld [vmem:[%s5693_s6 + $0x2e0] sm:$0xff] }
 0x20b   :  { %1891 = vrot.lane.b32.xlu0 %v3405_v15, %s4126_s16  ;;  %v2074_v35 = vld [vmem:[%s5693_s6 + $0x3f0] sm:$0xff]  ;;  %v2073_v38 = vld [vmem:[%s5693_s6 + $0x3e8] sm:$0xff]  ;;  %v2024_v20 = vld [vmem:[%s5693_s6 + $0x260] sm:$0xff] }
 0x20c   :  { %1906 = vrot.lane.b32.xlu1 %v3406_v57, %s4126_s16  ;;  %v2252_v19 = vunpack.c.0.s8 %v2251_v25  ;;  %v2058_v6 = vld [vmem:[%s5693_s6 + $0x370] sm:$0xff]  ;;  %v2057_v40 = vld [vmem:[%s5693_s6 + $0x368] sm:$0xff]  ;;  %v2039_v42 = vld [vmem:[%s5693_s6 + $0x2d8] sm:$0xff] }
 0x20d   :  { %v2072_v44 = vld [vmem:[%s5693_s6 + $0x3e0] sm:$0xff]  ;;  %v2023_v45 = vld [vmem:[%s5693_s6 + $0x258] sm:$0xff]  ;;  %v2038_v10 = vld [vmem:[%s5693_s6 + $0x2d0] sm:$0xff] }
 0x20e   :  { %v4895_v60 = vsub.s32 %v2252_v19, %v2254_v14  ;;  %v2056_v46 = vld [vmem:[%s5693_s6 + $0x360] sm:$0xff]  ;;  %v2071_v47 = vld [vmem:[%s5693_s6 + $0x3d8] sm:$0xff]  ;;  %v2022_v21 = vld [vmem:[%s5693_s6 + $0x250] sm:$0xff] }
 0x20f   :  { %1921 = vrot.lane.b32.xlu0 %v3407_v53, %s4126_s16  ;;  %v2055_v62 = vld [vmem:[%s5693_s6 + $0x358] sm:$0xff]  ;;  %v2037_v3 = vld [vmem:[%s5693_s6 + $0x2c8] sm:$0xff]  ;;  %v2070_v49 = vld [vmem:[%s5693_s6 + $0x3d0] sm:$0xff] }
 0x210   :  { %1936 = vrot.lane.b32.xlu1 %v3408_v50, %s4126_s16  ;;  %v2021_v52 = vld [vmem:[%s5693_s6 + $0x248] sm:$0xff]  ;;  %v2054_v15 = vld [vmem:[%s5693_s6 + $0x350] sm:$0xff]  ;;  %v2036_v54 = vld [vmem:[%s5693_s6 + $0x2c0] sm:$0xff] }
 0x211   :  { %v2069_v56 = vld [vmem:[%s5693_s6 + $0x3c8] sm:$0xff]  ;;  %v2020_v53 = vld [vmem:[%s5693_s6 + $0x240] sm:$0xff]  ;;  %v2019_v55 = vld [vmem:[%s5693_s6 + $0x238] sm:$0xff] }
 0x212   :  { %v2053_v50 = vld [vmem:[%s5693_s6 + $0x348] sm:$0xff]  ;;  %v2052_v25 = vld [vmem:[%s5693_s6 + $0x340] sm:$0xff]  ;;  %v2034_v0 = vld [vmem:[%s5693_s6 + $0x2b0] sm:$0xff] }
 0x213   :  { %v2051_v19 = vld [vmem:[%s5693_s6 + $0x338] sm:$0xff]  ;;  %v2033_v14 = vld [vmem:[%s5693_s6 + $0x2a8] sm:$0xff] }
 0x25f   :  { %v1712_v59 = vpop.permute.xlu1 %1711 }
 0x260   :  { %1714 = vst.msk [vmem:[#allocation4 + $0x4] sm:$0x3] %vm1683_vm8, %v1712_v59  ;;  %v2035_v59 = vld [vmem:[%s5693_s6 + $0x2b8] sm:$0xff] }
 0x261   :  { %v1681_v61 = vpop.permute.xlu0 %1680 }
 0x262   :  { %1684 = vst.msk [vmem:[#allocation4] sm:$0x3] %vm1683_vm8, %v1681_v61  ;;  %v2068_v61 = vld [vmem:[%s5693_s6 + $0x3c0] sm:$0xff] }
 0x265   :  { %v1697_v17 = vpop.permute.xlu0 %1696 }
 0x266   :  { %v1727_v63 = vpop.permute.xlu1 %1726  ;;  %1699 = vst.msk [vmem:[#allocation4 + $0x2] sm:$0x3] %vm1683_vm8, %v1697_v17  ;;  %v2067_v17 = vld [vmem:[%s5693_s6 + $0x3b8] sm:$0xff] }
 0x267   :  { %1729 = vst.msk [vmem:[#allocation4 + $0x6] sm:$0x3] %vm1683_vm8, %v1727_v63  ;;  %v2018_v63 = vld [vmem:[%s5693_s6 + $0x230] sm:$0xff] }
 0x269   :  { %v1742_v26 = vpop.permute.xlu0 %1741 }
 0x26a   :  { %v1757_v5 = vpop.permute.xlu1 %1756  ;;  %1744 = vst.msk [vmem:[#allocation4 + $0x8] sm:$0x3] %vm1683_vm8, %v1742_v26  ;;  %v2066_v26 = vld [vmem:[%s5693_s6 + $0x3b0] sm:$0xff] }
 0x26b   :  { %1759 = vst.msk [vmem:[#allocation4 + $0xa] sm:$0x3] %vm1683_vm8, %v1757_v5  ;;  %v2017_v5 = vld [vmem:[%s5693_s6 + $0x228] sm:$0xff] }
 0x26d   :  { %v1772_v22 = vpop.permute.xlu0 %1771 }
 0x26e   :  { %v1787_v24 = vpop.permute.xlu1 %1786  ;;  %1774 = vst.msk [vmem:[#allocation4 + $0xc] sm:$0x3] %vm1683_vm8, %v1772_v22  ;;  %v1943_v18 = vld [vmem:[#allocation4] sm:$0xff] }
 0x26f   :  { %1789 = vst.msk [vmem:[#allocation4 + $0xe] sm:$0x3] %vm1683_vm8, %v1787_v24  ;;  %v2256_v28 = vrot.slane %v1943_v18, %v4895_v60  ;;  %v2249_v2 = vcombine.high %v1943_v18, %v1943_v18  ;;  %v2050_v22 = vld [vmem:[%s5693_s6 + $0x330] sm:$0xff]  ;;  %v2032_v24 = vld [vmem:[%s5693_s6 + $0x2a0] sm:$0xff]  ;;  %v2065_v18 = vld [vmem:[%s5693_s6 + $0x3a8] sm:$0xff] }
 0x271   :  { %v1802_v23 = vpop.permute.xlu0 %1801  ;;  %v2264_v29 = vcombine.high %v2256_v28, %v2256_v28  ;;  %v2263_v12 = vrot.slane %v2249_v2, %v4895_v60  ;;  %v2049_v2 = vld [vmem:[%s5693_s6 + $0x328] sm:$0xff] }
 0x272   :  { %v1817_v1 = vpop.permute.xlu1 %1816  ;;  %1804 = vst.msk [vmem:[#allocation4 + $0x10] sm:$0x3] %vm1683_vm8, %v1802_v23  ;;  %v2031_v23 = vld [vmem:[%s5693_s6 + $0x298] sm:$0xff] }
 0x273   :  { %1819 = vst.msk [vmem:[#allocation4 + $0x12] sm:$0x3] %vm1683_vm8, %v1817_v1  ;;  %2421 = vmatprep.mubr.f32.mxu0 %v2264_v29  ;;  %v2265_v32 = vcombine.high %v2263_v12, %v2263_v12  ;;  %v2064_v29 = vld [vmem:[%s5693_s6 + $0x3a0] sm:$0xff] }
 0x274   :  { %2422 = vmatmul.mubr.f32.vlgmr.msra.gmra.mxu0 %v2256_v28  ;;  %v2016_v28 = vld [vmem:[%s5693_s6 + $0x220] sm:$0xff] }
 0x275   :  { %3618 = vmatpush3.msra.mxu0 %v2027_v30  ;;  %2491 = vmatprep.mubr.f32.mxu1 %v2265_v32  ;;  %v1832_v4 = vpop.permute.xlu0 %1831  ;;  %v2048_v1 = vld [vmem:[%s5693_s6 + $0x320] sm:$0xff]  ;;  %v2030_v30 = vld [vmem:[%s5693_s6 + $0x290] sm:$0xff]  ;;  %v2063_v32 = vld [vmem:[%s5693_s6 + $0x398] sm:$0xff] }
 0x276   :  { %3619 = vmatprep.subr.mxu0 %v2042_v7  ;;  %v1847_v36 = vpop.permute.xlu1 %1846  ;;  %1834 = vst.msk [vmem:[#allocation4 + $0x14] sm:$0x3] %vm1683_vm8, %v1832_v4  ;;  %2492 = vmatmul.mubr.f32.vlgmr.msra.gmra.mxu1 %v2263_v12  ;;  %v1944_v37 = vld [vmem:[#allocation4 + $0x8] sm:$0xff]  ;;  %v2014_v7 = vld [vmem:[%s5693_s6 + $0x210] sm:$0xff]  ;;  %v2029_v4 = vld [vmem:[%s5693_s6 + $0x288] sm:$0xff] }
 0x277   :  { %1849 = vst.msk [vmem:[#allocation4 + $0x16] sm:$0x3] %vm1683_vm8, %v1847_v36  ;;  %3620 = vmatpush3.msra.mxu0 %v2026_v33  ;;  %3653 = vmatpush3.msra.mxu1 %v2059_v27  ;;  %v4936_v39 = vrot.slane %v1944_v37, %v4895_v60  ;;  %v2266_v31 = vcombine.high %v1944_v37, %v1944_v37  ;;  %v2015_v12 = vld [vmem:[%s5693_s6 + $0x218] sm:$0xff]  ;;  %v2046_v36 = vld [vmem:[%s5693_s6 + $0x310] sm:$0xff] }
 0x278   :  { %3621 = vmatprep.subr.mxu0 %v2041_v34  ;;  %3654 = vmatprep.subr.mxu1 %v2074_v35  ;;  %v2047_v33 = vld [vmem:[%s5693_s6 + $0x318] sm:$0xff]  ;;  %v2062_v34 = vld [vmem:[%s5693_s6 + $0x390] sm:$0xff]  ;;  %v2013_v35 = vld [vmem:[%s5693_s6 + $0x208] sm:$0xff] }
 0x279   :  { %3622 = vmatpush3.msra.mxu0 %v2025_v9  ;;  %3655 = vmatpush3.msra.mxu1 %v2058_v6  ;;  %v1862_v41 = vpop.permute.xlu0 %1861  ;;  %v2281_v11 = vcombine.high %v4936_v39, %v4936_v39  ;;  %v4950_v8 = vrot.slane %v2266_v31, %v4895_v60  ;;  %v2028_v9 = vld [vmem:[%s5693_s6 + $0x280] sm:$0xff]  ;;  %v2061_v6 = vld [vmem:[%s5693_s6 + $0x388] sm:$0xff] }
 0x27a   :  { %3623 = vmatprep.subr.mxu0 %v2040_v16  ;;  %3656 = vmatprep.subr.mxu1 %v2073_v38  ;;  %v1877_v43 = vpop.permute.xlu1 %1876  ;;  %1864 = vst.msk [vmem:[#allocation4 + $0x18] sm:$0x3] %vm1683_vm8, %v1862_v41  ;;  %v2012_v16 = vld [vmem:[%s5693_s6 + $0x200] sm:$0xff]  ;;  %v2045_v38 = vld [vmem:[%s5693_s6 + $0x308] sm:$0xff] }
 0x27b   :  { %1879 = vst.msk [vmem:[#allocation4 + $0x1a] sm:$0x3] %vm1683_vm8, %v1877_v43  ;;  %3624 = vmatpush3.msra.mxu0 %v2024_v20  ;;  %3657 = vmatpush3.msra.mxu1 %v2057_v40  ;;  %v2282_v13 = vcombine.high %v4950_v8, %v4950_v8  ;;  %v2060_v20 = vld [vmem:[%s5693_s6 + $0x380] sm:$0xff]  ;;  %v2107_v40 = vld [vmem:[%s5693_s6 + $0x4f8] sm:$0xff] }
 0x27c   :  { %3625 = vmatprep.subr.mxu0 %v2039_v42  ;;  %2561 = vmatprep.mubr.f32.mxu0 %v2281_v11  ;;  %v2044_v41 = vld [vmem:[%s5693_s6 + $0x300] sm:$0xff]  ;;  %v2091_v42 = vld [vmem:[%s5693_s6 + $0x478] sm:$0xff] }
 0x27d   :  { %3658 = vmatprep.subr.mxu1 %v2072_v44  ;;  %3626 = vmatpush3.msra.mxu0 %v2023_v45  ;;  %v1892_v51 = vpop.permute.xlu0 %1891  ;;  %v2106_v44 = vld [vmem:[%s5693_s6 + $0x4f0] sm:$0xff]  ;;  %v2139_v45 = vld [vmem:[%s5693_s6 + $0x5f8] sm:$0xff] }
 0x27e   :  { %3659 = vmatpush3.msra.mxu1 %v2056_v46  ;;  %3627 = vmatprep.subr.mxu0 %v2038_v10  ;;  %v1907_v48 = vpop.permute.xlu1 %1906  ;;  %1894 = vst.msk [vmem:[#allocation4 + $0x1c] sm:$0x3] %vm1683_vm8, %v1892_v51  ;;  %v1945_v27 = vld [vmem:[#allocation4 + $0x10] sm:$0xff]  ;;  %v2090_v46 = vld [vmem:[%s5693_s6 + $0x470] sm:$0xff]  ;;  %v2089_v51 = vld [vmem:[%s5693_s6 + $0x468] sm:$0xff] }
 0x27f   :  { %3660 = vmatprep.subr.mxu1 %v2071_v47  ;;  %2631 = vmatprep.mubr.f32.mxu1 %v2282_v13  ;;  %1909 = vst.msk [vmem:[#allocation4 + $0x1e] sm:$0x3] %vm1683_vm8, %v1907_v48  ;;  %v2283_v37 = vcombine.high %v1945_v27, %v1945_v27  ;;  %v5102_v31 = vrot.slane %v1945_v27, %v4895_v60  ;;  %v2105_v13 = vld [vmem:[%s5693_s6 + $0x4e8] sm:$0xff]  ;;  %v2138_v47 = vld [vmem:[%s5693_s6 + $0x5f0] sm:$0xff]  ;;  %v2088_v48 = vld [vmem:[%s5693_s6 + $0x460] sm:$0xff] }
 0x280   :  { %3628 = vmatpush3.msra.mxu0 %v2022_v21  ;;  %3661 = vmatpush3.msra.mxu1 %v2055_v62  ;;  %v2104_v21 = vld [vmem:[%s5693_s6 + $0x4e0] sm:$0xff]  ;;  %v2137_v62 = vld [vmem:[%s5693_s6 + $0x5e8] sm:$0xff] }
 0x281   :  { %3629 = vmatprep.subr.mxu0 %v2037_v3  ;;  %3662 = vmatprep.subr.mxu1 %v2070_v49  ;;  %v1922_v57 = vpop.permute.xlu0 %1921  ;;  %v5117_v11 = vrot.slane %v2283_v37, %v4895_v60  ;;  %v2298_v43 = vcombine.high %v5102_v31, %v5102_v31  ;;  %v2121_v3 = vld [vmem:[%s5693_s6 + $0x568] sm:$0xff]  ;;  %v2103_v49 = vld [vmem:[%s5693_s6 + $0x4d8] sm:$0xff]  ;;  %v2128_v27 = vld [vmem:[%s5693_s6 + $0x5a0] sm:$0xff] }
 0x282   :  { %3630 = vmatpush3.msra.mxu0 %v2021_v52  ;;  %3663 = vmatpush3.msra.mxu1 %v2054_v15  ;;  %v1937_v58 = vpop.permute.xlu1 %1936  ;;  %1924 = vst.msk [vmem:[#allocation4 + $0x20] sm:$0x3] %vm1683_vm8, %v1922_v57  ;;  %v2136_v52 = vld [vmem:[%s5693_s6 + $0x5e0] sm:$0xff]  ;;  %v2087_v15 = vld [vmem:[%s5693_s6 + $0x458] sm:$0xff] }
 0x283   :  { %3631 = vmatprep.subr.mxu0 %v2036_v54  ;;  %3664 = vmatprep.subr.mxu1 %v2069_v56  ;;  %1939 = vst.msk [vmem:[#allocation4 + $0x22] sm:$0x3] %vm1683_vm8, %v1937_v58  ;;  %v2299_v10 = vcombine.high %v5117_v11, %v5117_v11  ;;  %v2120_v54 = vld [vmem:[%s5693_s6 + $0x560] sm:$0xff]  ;;  %v2102_v56 = vld [vmem:[%s5693_s6 + $0x4d0] sm:$0xff]  ;;  %v2135_v57 = vld [vmem:[%s5693_s6 + $0x5d8] sm:$0xff] }
 0x284   :  { %3632 = vmatpush3.msra.mxu0 %v2020_v53  ;;  %3665 = vmatpush3.msra.mxu1 %v2053_v50  ;;  %v2086_v53 = vld [vmem:[%s5693_s6 + $0x450] sm:$0xff]  ;;  %v2119_v50 = vld [vmem:[%s5693_s6 + $0x558] sm:$0xff]  ;;  %v2101_v58 = vld [vmem:[%s5693_s6 + $0x4c8] sm:$0xff] }
 0x285   :  { %3633 = vmatprep.subr.mxu0 %v2035_v59  ;;  %3666 = vmatprep.subr.mxu1 %v2068_v61  ;;  %v2134_v59 = vld [vmem:[%s5693_s6 + $0x5d0] sm:$0xff]  ;;  %v2085_v61 = vld [vmem:[%s5693_s6 + $0x448] sm:$0xff] }
 0x286   :  { %3634 = vmatpush3.msra.mxu0 %v2019_v55  ;;  %3667 = vmatpush3.msra.mxu1 %v2052_v25  ;;  %v2118_v55 = vld [vmem:[%s5693_s6 + $0x550] sm:$0xff]  ;;  %v2100_v25 = vld [vmem:[%s5693_s6 + $0x4c0] sm:$0xff]  ;;  %v1946_v37 = vld [vmem:[#allocation4 + $0x18] sm:$0xff] }
 0x287   :  { %3635 = vmatprep.subr.mxu0 %v2034_v0  ;;  %3668 = vmatprep.subr.mxu1 %v2067_v17  ;;  %v2133_v0 = vld [vmem:[%s5693_s6 + $0x5c8] sm:$0xff]  ;;  %v2084_v17 = vld [vmem:[%s5693_s6 + $0x440] sm:$0xff] }
 0x288   :  { %3636 = vmatpush3.msra.mxu0 %v2018_v63  ;;  %3669 = vmatpush3.msra.mxu1 %v2051_v19  ;;  %v2117_v63 = vld [vmem:[%s5693_s6 + $0x548] sm:$0xff]  ;;  %v2099_v19 = vld [vmem:[%s5693_s6 + $0x4b8] sm:$0xff] }
 0x289   :  { %3637 = vmatprep.subr.mxu0 %v2033_v14  ;;  %3670 = vmatprep.subr.mxu1 %v2066_v26  ;;  %v2132_v14 = vld [vmem:[%s5693_s6 + $0x5c0] sm:$0xff]  ;;  %v2083_v26 = vld [vmem:[%s5693_s6 + $0x438] sm:$0xff] }
 0x28a   :  { %3638 = vmatpush3.msra.mxu0 %v2017_v5  ;;  %3671 = vmatpush3.msra.mxu1 %v2050_v22  ;;  %v2116_v5 = vld [vmem:[%s5693_s6 + $0x540] sm:$0xff]  ;;  %v2098_v22 = vld [vmem:[%s5693_s6 + $0x4b0] sm:$0xff] }
 0x28b   :  { %3639 = vmatprep.subr.mxu0 %v2032_v24  ;;  %3672 = vmatprep.subr.mxu1 %v2065_v18  ;;  %v2131_v24 = vld [vmem:[%s5693_s6 + $0x5b8] sm:$0xff]  ;;  %v2082_v18 = vld [vmem:[%s5693_s6 + $0x430] sm:$0xff] }
 0x28c   :  { %3640 = vmatpush3.msra.mxu0 %v2016_v28  ;;  %3673 = vmatpush3.msra.mxu1 %v2049_v2  ;;  %v2115_v28 = vld [vmem:[%s5693_s6 + $0x538] sm:$0xff]  ;;  %v2097_v2 = vld [vmem:[%s5693_s6 + $0x4a8] sm:$0xff] }
 0x28d   :  { %3641 = vmatprep.subr.mxu0 %v2031_v23  ;;  %3674 = vmatprep.subr.mxu1 %v2064_v29  ;;  %v2130_v23 = vld [vmem:[%s5693_s6 + $0x5b0] sm:$0xff]  ;;  %v2081_v29 = vld [vmem:[%s5693_s6 + $0x428] sm:$0xff] }
 0x28e   :  { %3642 = vmatpush3.msra.mxu0 %v2015_v12  ;;  %3675 = vmatpush3.msra.mxu1 %v2048_v1  ;;  %v2114_v12 = vld [vmem:[%s5693_s6 + $0x530] sm:$0xff]  ;;  %v2096_v1 = vld [vmem:[%s5693_s6 + $0x4a0] sm:$0xff] }
 0x28f   :  { %3643 = vmatprep.subr.mxu0 %v2030_v30  ;;  %3676 = vmatprep.subr.mxu1 %v2063_v32  ;;  %v2129_v30 = vld [vmem:[%s5693_s6 + $0x5a8] sm:$0xff]  ;;  %v2080_v32 = vld [vmem:[%s5693_s6 + $0x420] sm:$0xff] }
 0x290   :  { %3644 = vmatpush3.msra.mxu0 %v2014_v7  ;;  %3677 = vmatpush3.msra.mxu1 %v2047_v33  ;;  %v2113_v7 = vld [vmem:[%s5693_s6 + $0x528] sm:$0xff]  ;;  %v2095_v33 = vld [vmem:[%s5693_s6 + $0x498] sm:$0xff] }
 0x291   :  { %3645 = vmatprep.subr.mxu0 %v2029_v4  ;;  %3678 = vmatprep.subr.mxu1 %v2062_v34  ;;  %v2079_v4 = vld [vmem:[%s5693_s6 + $0x418] sm:$0xff]  ;;  %v2112_v34 = vld [vmem:[%s5693_s6 + $0x520] sm:$0xff] }
 0x292   :  { %3646 = vmatpush3.msra.mxu0 %v2013_v35  ;;  %3679 = vmatpush3.msra.mxu1 %v2046_v36  ;;  %v2094_v35 = vld [vmem:[%s5693_s6 + $0x490] sm:$0xff]  ;;  %v2127_v36 = vld [vmem:[%s5693_s6 + $0x598] sm:$0xff] }
 0x293   :  { %3647 = vmatprep.subr.mxu0 %v2028_v9  ;;  %3680 = vmatprep.subr.mxu1 %v2061_v6  ;;  %v2078_v9 = vld [vmem:[%s5693_s6 + $0x410] sm:$0xff]  ;;  %v2111_v6 = vld [vmem:[%s5693_s6 + $0x518] sm:$0xff] }
 0x294   :  { %3648 = vmatpush3.msra.mxu0 %v2012_v16  ;;  %3681 = vmatpush3.msra.mxu1 %v2045_v38  ;;  %v2093_v16 = vld [vmem:[%s5693_s6 + $0x488] sm:$0xff]  ;;  %v2126_v38 = vld [vmem:[%s5693_s6 + $0x590] sm:$0xff] }
 0x295   :  { %2562 = vmatmul.mubr.f32.vlgmr.msra.gmra.mxu0 %v4936_v39  ;;  %3682 = vmatprep.subr.mxu1 %v2060_v20  ;;  %v2123_v39 = vld [vmem:[%s5693_s6 + $0x578] sm:$0xff]  ;;  %v2077_v20 = vld [vmem:[%s5693_s6 + $0x408] sm:$0xff] }
 0x296   :  { %3687 = vmatprep.subr.mxu0 %v2107_v40  ;;  %3683 = vmatpush3.msra.mxu1 %v2044_v41  ;;  %v2110_v40 = vld [vmem:[%s5693_s6 + $0x510] sm:$0xff]  ;;  %v2092_v41 = vld [vmem:[%s5693_s6 + $0x480] sm:$0xff] }
 0x297   :  { %3688 = vmatpush3.msra.mxu0 %v2091_v42  ;;  %2701 = vmatprep.mubr.f32.mxu0 %v2298_v43  ;;  %v2125_v42 = vld [vmem:[%s5693_s6 + $0x588] sm:$0xff]  ;;  %v2300_v43 = vcombine.high %v1946_v37, %v1946_v37 }
 0x298   :  { %2632 = vmatmul.mubr.f32.vlgmr.msra.gmra.mxu1 %v4950_v8  ;;  %3689 = vmatprep.subr.mxu0 %v2106_v44  ;;  %v2122_v8 = vld [vmem:[%s5693_s6 + $0x570] sm:$0xff]  ;;  %v2076_v44 = vld [vmem:[%s5693_s6 + $0x400] sm:$0xff] }
 0x299   :  { %3722 = vmatprep.subr.mxu1 %v2139_v45  ;;  %3690 = vmatpush3.msra.mxu0 %v2090_v46  ;;  %v2109_v45 = vld [vmem:[%s5693_s6 + $0x508] sm:$0xff]  ;;  %v5306_v46 = vrot.slane %v1946_v37, %v4895_v60  ;;  %v2192_v37 = vld [vmem:[%s5693_s6 + $0x7a0] sm:$0xff] }
 0x29a   :  { %3723 = vmatpush3.msra.mxu1 %v2123_v39  ;;  %2771 = vmatprep.mubr.f32.mxu1 %v2299_v10  ;;  %v2124_v39 = vld [vmem:[%s5693_s6 + $0x580] sm:$0xff]  ;;  %v2171_v10 = vld [vmem:[%s5693_s6 + $0x6f8] sm:$0xff] }
 0x29b   :  { %3691 = vmatprep.subr.mxu0 %v2105_v13  ;;  %3724 = vmatprep.subr.mxu1 %v2138_v47  ;;  %v2108_v13 = vld [vmem:[%s5693_s6 + $0x500] sm:$0xff]  ;;  %v2155_v47 = vld [vmem:[%s5693_s6 + $0x678] sm:$0xff] }
 0x29c   :  { %3692 = vmatpush3.msra.mxu0 %v2089_v51  ;;  %3725 = vmatpush3.msra.mxu1 %v2122_v8  ;;  %v5321_v51 = vrot.slane %v2300_v43, %v4895_v60  ;;  %v2315_v8 = vcombine.high %v5306_v46, %v5306_v46  ;;  %v2157_v43 = vld [vmem:[%s5693_s6 + $0x688] sm:$0xff] }
 0x29d   :  { %3693 = vmatprep.subr.mxu0 %v2104_v21  ;;  %3726 = vmatprep.subr.mxu1 %v2137_v62  ;;  %v2170_v21 = vld [vmem:[%s5693_s6 + $0x6f0] sm:$0xff]  ;;  %v2203_v62 = vld [vmem:[%s5693_s6 + $0x7f8] sm:$0xff] }
 0x29e   :  { %3694 = vmatpush3.msra.mxu0 %v2088_v48  ;;  %3727 = vmatpush3.msra.mxu1 %v2121_v3  ;;  %v2154_v48 = vld [vmem:[%s5693_s6 + $0x670] sm:$0xff]  ;;  %v2316_v3 = vcombine.high %v5321_v51, %v5321_v51 }
 0x29f   :  { %3695 = vmatprep.subr.mxu0 %v2103_v49  ;;  %3728 = vmatprep.subr.mxu1 %v2136_v52  ;;  %v2169_v49 = vld [vmem:[%s5693_s6 + $0x6e8] sm:$0xff]  ;;  %v2202_v52 = vld [vmem:[%s5693_s6 + $0x7f0] sm:$0xff] }
 0x2a0   :  { %3696 = vmatpush3.msra.mxu0 %v2087_v15  ;;  %3729 = vmatpush3.msra.mxu1 %v2120_v54  ;;  %v2153_v15 = vld [vmem:[%s5693_s6 + $0x668] sm:$0xff]  ;;  %v2168_v54 = vld [vmem:[%s5693_s6 + $0x6e0] sm:$0xff] }
 0x2a1   :  { %3697 = vmatprep.subr.mxu0 %v2102_v56  ;;  %3730 = vmatprep.subr.mxu1 %v2135_v57  ;;  %v2201_v56 = vld [vmem:[%s5693_s6 + $0x7e8] sm:$0xff]  ;;  %v2152_v57 = vld [vmem:[%s5693_s6 + $0x660] sm:$0xff] }
 0x2a2   :  { %3698 = vmatpush3.msra.mxu0 %v2086_v53  ;;  %3731 = vmatpush3.msra.mxu1 %v2119_v50  ;;  %v2185_v53 = vld [vmem:[%s5693_s6 + $0x768] sm:$0xff]  ;;  %v2167_v50 = vld [vmem:[%s5693_s6 + $0x6d8] sm:$0xff] }
 0x2a3   :  { %3699 = vmatprep.subr.mxu0 %v2101_v58  ;;  %3732 = vmatprep.subr.mxu1 %v2134_v59  ;;  %v2200_v58 = vld [vmem:[%s5693_s6 + $0x7e0] sm:$0xff]  ;;  %v2151_v59 = vld [vmem:[%s5693_s6 + $0x658] sm:$0xff] }
 0x2a4   :  { %3700 = vmatpush3.msra.mxu0 %v2085_v61  ;;  %3733 = vmatpush3.msra.mxu1 %v2118_v55  ;;  %v2184_v61 = vld [vmem:[%s5693_s6 + $0x760] sm:$0xff]  ;;  %v2166_v55 = vld [vmem:[%s5693_s6 + $0x6d0] sm:$0xff] }
 0x2a5   :  { %3701 = vmatprep.subr.mxu0 %v2100_v25  ;;  %3734 = vmatprep.subr.mxu1 %v2133_v0  ;;  %v2199_v25 = vld [vmem:[%s5693_s6 + $0x7d8] sm:$0xff]  ;;  %v2150_v0 = vld [vmem:[%s5693_s6 + $0x650] sm:$0xff] }
 0x2a6   :  { %3702 = vmatpush3.msra.mxu0 %v2084_v17  ;;  %3735 = vmatpush3.msra.mxu1 %v2117_v63  ;;  %v2183_v17 = vld [vmem:[%s5693_s6 + $0x758] sm:$0xff]  ;;  %v2165_v63 = vld [vmem:[%s5693_s6 + $0x6c8] sm:$0xff] }
 0x2a7   :  { %3703 = vmatprep.subr.mxu0 %v2099_v19  ;;  %3736 = vmatprep.subr.mxu1 %v2132_v14  ;;  %v2198_v19 = vld [vmem:[%s5693_s6 + $0x7d0] sm:$0xff]  ;;  %v2149_v14 = vld [vmem:[%s5693_s6 + $0x648] sm:$0xff] }
 0x2a8   :  { %3704 = vmatpush3.msra.mxu0 %v2083_v26  ;;  %3737 = vmatpush3.msra.mxu1 %v2116_v5  ;;  %v2182_v26 = vld [vmem:[%s5693_s6 + $0x750] sm:$0xff]  ;;  %v2164_v5 = vld [vmem:[%s5693_s6 + $0x6c0] sm:$0xff] }
 0x2a9   :  { %3705 = vmatprep.subr.mxu0 %v2098_v22  ;;  %3738 = vmatprep.subr.mxu1 %v2131_v24  ;;  %v2197_v22 = vld [vmem:[%s5693_s6 + $0x7c8] sm:$0xff]  ;;  %v2148_v24 = vld [vmem:[%s5693_s6 + $0x640] sm:$0xff] }
 0x2aa   :  { %3706 = vmatpush3.msra.mxu0 %v2082_v18  ;;  %3739 = vmatpush3.msra.mxu1 %v2115_v28  ;;  %v2181_v18 = vld [vmem:[%s5693_s6 + $0x748] sm:$0xff]  ;;  %v2163_v28 = vld [vmem:[%s5693_s6 + $0x6b8] sm:$0xff] }
 0x2ab   :  { %3707 = vmatprep.subr.mxu0 %v2097_v2  ;;  %3740 = vmatprep.subr.mxu1 %v2130_v23  ;;  %v2196_v2 = vld [vmem:[%s5693_s6 + $0x7c0] sm:$0xff]  ;;  %v2147_v23 = vld [vmem:[%s5693_s6 + $0x638] sm:$0xff] }
 0x2ac   :  { %3708 = vmatpush3.msra.mxu0 %v2081_v29  ;;  %3741 = vmatpush3.msra.mxu1 %v2114_v12  ;;  %v2180_v29 = vld [vmem:[%s5693_s6 + $0x740] sm:$0xff]  ;;  %v2162_v12 = vld [vmem:[%s5693_s6 + $0x6b0] sm:$0xff] }
 0x2ad   :  { %3709 = vmatprep.subr.mxu0 %v2096_v1  ;;  %3742 = vmatprep.subr.mxu1 %v2129_v30  ;;  %v2195_v1 = vld [vmem:[%s5693_s6 + $0x7b8] sm:$0xff]  ;;  %v2146_v30 = vld [vmem:[%s5693_s6 + $0x630] sm:$0xff] }
 0x2ae   :  { %3710 = vmatpush3.msra.mxu0 %v2080_v32  ;;  %3743 = vmatpush3.msra.mxu1 %v2113_v7  ;;  %v2179_v32 = vld [vmem:[%s5693_s6 + $0x738] sm:$0xff]  ;;  %v2161_v7 = vld [vmem:[%s5693_s6 + $0x6a8] sm:$0xff] }
 0x2af   :  { %3711 = vmatprep.subr.mxu0 %v2095_v33  ;;  %3744 = vmatprep.subr.mxu1 %v2128_v27  ;;  %v2194_v33 = vld [vmem:[%s5693_s6 + $0x7b0] sm:$0xff]  ;;  %v2145_v27 = vld [vmem:[%s5693_s6 + $0x628] sm:$0xff] }
 0x2b0   :  { %3712 = vmatpush3.msra.mxu0 %v2079_v4  ;;  %3745 = vmatpush3.msra.mxu1 %v2112_v34  ;;  %v2178_v4 = vld [vmem:[%s5693_s6 + $0x730] sm:$0xff]  ;;  %v2160_v34 = vld [vmem:[%s5693_s6 + $0x6a0] sm:$0xff] }
 0x2b1   :  { %3713 = vmatprep.subr.mxu0 %v2094_v35  ;;  %3746 = vmatprep.subr.mxu1 %v2127_v36  ;;  %v2193_v35 = vld [vmem:[%s5693_s6 + $0x7a8] sm:$0xff]  ;;  %v2144_v36 = vld [vmem:[%s5693_s6 + $0x620] sm:$0xff] }
 0x2b2   :  { %3714 = vmatpush3.msra.mxu0 %v2078_v9  ;;  %3747 = vmatpush3.msra.mxu1 %v2111_v6  ;;  %v2177_v9 = vld [vmem:[%s5693_s6 + $0x728] sm:$0xff]  ;;  %v2159_v6 = vld [vmem:[%s5693_s6 + $0x698] sm:$0xff] }
 0x2b3   :  { %3715 = vmatprep.subr.mxu0 %v2093_v16  ;;  %3748 = vmatprep.subr.mxu1 %v2126_v38  ;;  %v2143_v16 = vld [vmem:[%s5693_s6 + $0x618] sm:$0xff]  ;;  %v2176_v38 = vld [vmem:[%s5693_s6 + $0x720] sm:$0xff] }
 0x2b4   :  { %3716 = vmatpush3.msra.mxu0 %v2077_v20  ;;  %3749 = vmatpush3.msra.mxu1 %v2110_v40  ;;  %v2158_v20 = vld [vmem:[%s5693_s6 + $0x690] sm:$0xff]  ;;  %v2191_v40 = vld [vmem:[%s5693_s6 + $0x798] sm:$0xff] }
 0x2b5   :  { %3717 = vmatprep.subr.mxu0 %v2092_v41  ;;  %3750 = vmatprep.subr.mxu1 %v2125_v42  ;;  %v2142_v41 = vld [vmem:[%s5693_s6 + $0x610] sm:$0xff]  ;;  %v2175_v42 = vld [vmem:[%s5693_s6 + $0x718] sm:$0xff] }
 0x2b6   :  { %3718 = vmatpush3.msra.mxu0 %v2076_v44  ;;  %3751 = vmatpush3.msra.mxu1 %v2109_v45  ;;  %v2190_v44 = vld [vmem:[%s5693_s6 + $0x790] sm:$0xff] }
 0x2b7   :  { %2702 = vmatmul.mubr.f32.vlgmr.msra.gmra.mxu0 %v5102_v31  ;;  %3752 = vmatprep.subr.mxu1 %v2124_v39  ;;  %v2187_v31 = vld [vmem:[%s5693_s6 + $0x778] sm:$0xff]  ;;  %v1947_v45 = vld [vmem:[#allocation4 + $0x20] sm:$0x3f]  ;;  %v2141_v39 = vld [vmem:[%s5693_s6 + $0x608] sm:$0xff] }
 0x2b8   :  { %3757 = vmatprep.subr.mxu0 %v2171_v10  ;;  %3753 = vmatpush3.msra.mxu1 %v2108_v13  ;;  %v2174_v10 = vld [vmem:[%s5693_s6 + $0x710] sm:$0xff]  ;;  %v2156_v13 = vld [vmem:[%s5693_s6 + $0x680] sm:$0xff] }
 0x2b9   :  { %3758 = vmatpush3.msra.mxu0 %v2155_v47  ;;  %2841 = vmatprep.mubr.f32.mxu0 %v2315_v8  ;;  %v2189_v47 = vld [vmem:[%s5693_s6 + $0x788] sm:$0xff]  ;;  %v2140_v8 = vld [vmem:[%s5693_s6 + $0x600] sm:$0xff] }
 0x2ba   :  { %2772 = vmatmul.mubr.f32.vlgmr.msra.gmra.mxu1 %v5117_v11  ;;  %3759 = vmatprep.subr.mxu0 %v2170_v21  ;;  %v2186_v11 = vld [vmem:[%s5693_s6 + $0x770] sm:$0xff]  ;;  %v2173_v21 = vld [vmem:[%s5693_s6 + $0x708] sm:$0xff] }
 0x2bb   :  { %3792 = vmatprep.subr.mxu1 %v2203_v62  ;;  %3760 = vmatpush3.msra.mxu0 %v2154_v48  ;;  %v5510_v62 = vrot.slane %v1947_v45, %v4895_v60  ;;  %v2188_v48 = vld [vmem:[%s5693_s6 + $0x780] sm:$0xff] }
 0x2bc   :  { %3793 = vmatpush3.msra.mxu1 %v2187_v31  ;;  %2911 = vmatprep.mubr.f32.mxu1 %v2316_v3  ;;  %v2235_v31 = vld [vmem:[%s5693_s6 + $0x8f8] sm:$0xff]  ;;  %v2172_v3 = vld [vmem:[%s5693_s6 + $0x700] sm:$0xff] }
 0x2bd   :  { %3761 = vmatprep.subr.mxu0 %v2169_v49  ;;  %3794 = vmatprep.subr.mxu1 %v2202_v52  ;;  %v2219_v49 = vld [vmem:[%s5693_s6 + $0x878] sm:$0xff]  ;;  %v2332_v52 = vcombine.high %v5510_v62, %v5510_v62 }
 0x2be   :  { %3762 = vmatpush3.msra.mxu0 %v2153_v15  ;;  %3795 = vmatpush3.msra.mxu1 %v2186_v11  ;;  %v2234_v15 = vld [vmem:[%s5693_s6 + $0x8f0] sm:$0xff]  ;;  %v2317_v11 = vcombine.high %v1947_v45, %v1947_v45 }
 0x2bf   :  { %3763 = vmatprep.subr.mxu0 %v2168_v54  ;;  %3796 = vmatprep.subr.mxu1 %v2201_v56  ;;  %v2218_v54 = vld [vmem:[%s5693_s6 + $0x870] sm:$0xff]  ;;  %v2236_v56 = vld [vmem:[%s5693_s6 + $0x900] sm:$0xf] }
 0x2c0   :  { %3764 = vmatpush3.msra.mxu0 %v2152_v57  ;;  %3797 = vmatpush3.msra.mxu1 %v2185_v53  ;;  %v2217_v57 = vld [vmem:[%s5693_s6 + $0x868] sm:$0xff]  ;;  %v4128_v53 = vmov 0.0  }
 0x2c1   :  { %3765 = vmatprep.subr.mxu0 %v2167_v50  ;;  %3798 = vmatprep.subr.mxu1 %v2200_v58  ;;  %v2232_v50 = vld [vmem:[%s5693_s6 + $0x8e0] sm:$0xff]  ;;  %v2331_v58 = vrot.slane %v2317_v11, %v4895_v60  ;;  %v2215_v60 = vld [vmem:[%s5693_s6 + $0x858] sm:$0xff] }
 0x2c2   :  { %3766 = vmatpush3.msra.mxu0 %v2151_v59  ;;  %3799 = vmatpush3.msra.mxu1 %v2184_v61  ;;  %v2231_v59 = vld [vmem:[%s5693_s6 + $0x8d8] sm:$0xff]  ;;  %v2230_v61 = vld [vmem:[%s5693_s6 + $0x8d0] sm:$0xff] }
 0x2c3   :  { %3767 = vmatprep.subr.mxu0 %v2166_v55  ;;  %3800 = vmatprep.subr.mxu1 %v2199_v25  ;;  %v2214_v55 = vld [vmem:[%s5693_s6 + $0x850] sm:$0xff]  ;;  %v2229_v25 = vld [vmem:[%s5693_s6 + $0x8c8] sm:$0xff] }
 0x2c4   :  { %3768 = vmatpush3.msra.mxu0 %v2150_v0  ;;  %3801 = vmatpush3.msra.mxu1 %v2183_v17  ;;  %v2213_v0 = vld [vmem:[%s5693_s6 + $0x848] sm:$0xff]  ;;  %v2228_v17 = vld [vmem:[%s5693_s6 + $0x8c0] sm:$0xff] }
 0x2c5   :  { %3769 = vmatprep.subr.mxu0 %v2165_v63  ;;  %3802 = vmatprep.subr.mxu1 %v2198_v19  ;;  %v2212_v63 = vld [vmem:[%s5693_s6 + $0x840] sm:$0xff]  ;;  %v2227_v19 = vld [vmem:[%s5693_s6 + $0x8b8] sm:$0xff] }
 0x2c6   :  { %3770 = vmatpush3.msra.mxu0 %v2149_v14  ;;  %3803 = vmatpush3.msra.mxu1 %v2182_v26  ;;  %v2211_v14 = vld [vmem:[%s5693_s6 + $0x838] sm:$0xff]  ;;  %v2226_v26 = vld [vmem:[%s5693_s6 + $0x8b0] sm:$0xff] }
 0x2c7   :  { %3771 = vmatprep.subr.mxu0 %v2164_v5  ;;  %3804 = vmatprep.subr.mxu1 %v2197_v22  ;;  %v2210_v5 = vld [vmem:[%s5693_s6 + $0x830] sm:$0xff]  ;;  %v2225_v22 = vld [vmem:[%s5693_s6 + $0x8a8] sm:$0xff] }
 0x2c8   :  { %3772 = vmatpush3.msra.mxu0 %v2148_v24  ;;  %3805 = vmatpush3.msra.mxu1 %v2181_v18  ;;  %v2209_v24 = vld [vmem:[%s5693_s6 + $0x828] sm:$0xff]  ;;  %v2224_v18 = vld [vmem:[%s5693_s6 + $0x8a0] sm:$0xff] }
 0x2c9   :  { %3773 = vmatprep.subr.mxu0 %v2163_v28  ;;  %3806 = vmatprep.subr.mxu1 %v2196_v2  ;;  %v2208_v28 = vld [vmem:[%s5693_s6 + $0x820] sm:$0xff]  ;;  %v2223_v2 = vld [vmem:[%s5693_s6 + $0x898] sm:$0xff] }
 0x2ca   :  { %3774 = vmatpush3.msra.mxu0 %v2147_v23  ;;  %3807 = vmatpush3.msra.mxu1 %v2180_v29  ;;  %v2207_v23 = vld [vmem:[%s5693_s6 + $0x818] sm:$0xff]  ;;  %v2222_v29 = vld [vmem:[%s5693_s6 + $0x890] sm:$0xff] }
 0x2cb   :  { %3775 = vmatprep.subr.mxu0 %v2162_v12  ;;  %3808 = vmatprep.subr.mxu1 %v2195_v1  ;;  %v2206_v12 = vld [vmem:[%s5693_s6 + $0x810] sm:$0xff]  ;;  %v2221_v1 = vld [vmem:[%s5693_s6 + $0x888] sm:$0xff] }
 0x2cc   :  { %3776 = vmatpush3.msra.mxu0 %v2146_v30  ;;  %3809 = vmatpush3.msra.mxu1 %v2179_v32  ;;  %v2205_v30 = vld [vmem:[%s5693_s6 + $0x808] sm:$0xff]  ;;  %v2220_v32 = vld [vmem:[%s5693_s6 + $0x880] sm:$0xff] }
 0x2cd   :  { %3777 = vmatprep.subr.mxu0 %v2161_v7  ;;  %3810 = vmatprep.subr.mxu1 %v2194_v33  ;;  %v2204_v7 = vld [vmem:[%s5693_s6 + $0x800] sm:$0xff]  ;;  %v3062_v33 = vld [vmem:[%s5696_s8 + $0x18] sm:$0xff] }
 0x2ce   :  { %3778 = vmatpush3.msra.mxu0 %v2145_v27  ;;  %3811 = vmatpush3.msra.mxu1 %v2178_v4  ;;  %v3061_v27 = vld [vmem:[%s5696_s8 + $0x10] sm:$0xff]  ;;  %v3060_v4 = vld [vmem:[%s5696_s8 + $0x8] sm:$0xff] }
 0x2cf   :  { %3779 = vmatprep.subr.mxu0 %v2160_v34  ;;  %3812 = vmatprep.subr.mxu1 %v2193_v35  ;;  %v3059_v34 = vld [vmem:[%s5696_s8] sm:$0xff] }
 0x2d0   :  { %3780 = vmatpush3.msra.mxu0 %v2144_v36  ;;  %3813 = vmatpush3.msra.mxu1 %v2177_v9  ;;  %v3058_v35 = vld [vmem:[%s5690_s0] sm:$0x3]  ;;  %v4130_v36 = vmov 12   ;;  %v4131_v9 = vmov 13  }
 0x2d1   :  { %3781 = vmatprep.subr.mxu0 %v2159_v6  ;;  %3814 = vmatprep.subr.mxu1 %v2192_v37 }
 0x2d2   :  { %3782 = vmatpush3.msra.mxu0 %v2143_v16  ;;  %3815 = vmatpush3.msra.mxu1 %v2176_v38 }
 0x2d3   :  { %3783 = vmatprep.subr.mxu0 %v2158_v20  ;;  %3816 = vmatprep.subr.mxu1 %v2191_v40 }
 0x2d4   :  { %3784 = vmatpush3.msra.mxu0 %v2142_v41  ;;  %3817 = vmatpush3.msra.mxu1 %v2175_v42 }
 0x2d5   :  { %3785 = vmatprep.subr.mxu0 %v2157_v43  ;;  %3818 = vmatprep.subr.mxu1 %v2190_v44 }
 0x2d6   :  { %3786 = vmatpush3.msra.mxu0 %v2141_v39  ;;  %3819 = vmatpush3.msra.mxu1 %v2174_v10 }
 0x2d7   :  { %3787 = vmatprep.subr.mxu0 %v2156_v13  ;;  %3820 = vmatprep.subr.mxu1 %v2189_v47  ;;  %v3409_v47 = vld [vmem:[%s5697_s7] ss:$0 sm:$0xff] }
 0x2d8   :  { %3788 = vmatpush3.msra.mxu0 %v2140_v8  ;;  %3821 = vmatpush3.msra.mxu1 %v2173_v21 }
 0x2d9   :  { %2842 = vmatmul.mubr.f32.vlgmr.msra.gmra.mxu0 %v5306_v46  ;;  %3822 = vmatprep.subr.mxu1 %v2188_v48  ;;  %v2233_v46 = vld [vmem:[%s5693_s6 + $0x8e8] sm:$0xff] }
 0x2da   :  { %3827 = vmatprep.subr.mxu0 %v2235_v31  ;;  %3823 = vmatpush3.msra.mxu1 %v2172_v3 }
 0x2db   :  { %3828 = vmatpush3.msra.mxu0 %v2219_v49  ;;  %2981 = vmatprep.mubr.f32.mxu0 %v2332_v52 }
 0x2dc   :  { %2912 = vmatmul.mubr.f32.vlgmr.msra.gmra.mxu1 %v5321_v51  ;;  %3829 = vmatprep.subr.mxu0 %v2234_v15  ;;  %v2216_v51 = vld [vmem:[%s5693_s6 + $0x860] sm:$0xff] }
 0x2dd   :  { %3830 = vmatpush3.msra.mxu0 %v2218_v54  ;;  %4079 = vmatprep.subr.mxu1 %v4128_v53 }
 0x2de   :  { %3831 = vmatprep.subr.mxu0 %v2233_v46  ;;  %4080 = vmatpush3.msk.msra.mxu1 %vm122_vm0, %v2236_v56 }
 0x2df   :  { %3832 = vmatpush3.msra.mxu0 %v2217_v57  ;;  %4081 = vmatprep.mubr.msk.f32.mxu1 %vm4129_vm10, %v4128_v53 }
 0x2e0   :  { %3833 = vmatprep.subr.mxu0 %v2232_v50  ;;  %4082 = vmatmul.mubr.msk.f32.vlgmr.msra.gmra.mxu1 %vm2351_vm9, %v2331_v58 }
 0x2e1   :  { %3834 = vmatpush3.msra.mxu0 %v2216_v51  ;;  %4084 = vmatprep.subr.mxu1 %v4128_v53 }
 0x2e2   :  { %3835 = vmatprep.subr.mxu0 %v2231_v59  ;;  %4092 = vmatprep.mubr.msk.f32.mxu1 %vm4129_vm10, %v4128_v53 }
 0x2e3   :  { %3836 = vmatpush3.msra.mxu0 %v2215_v60  ;;  %4085 = vmatpush3.msra.mxu1 %v3062_v33 }
 0x2e4   :  { %3837 = vmatprep.subr.mxu0 %v2230_v61  ;;  %4086 = vmatprep.subr.mxu1 %v4128_v53 }
 0x2e5   :  { %3838 = vmatpush3.msra.mxu0 %v2214_v55  ;;  %4087 = vmatpush3.msra.mxu1 %v3061_v27 }
 0x2e6   :  { %3839 = vmatprep.subr.mxu0 %v2229_v25  ;;  %4088 = vmatprep.subr.mxu1 %v4128_v53 }
 0x2e7   :  { %3840 = vmatpush3.msra.mxu0 %v2213_v0  ;;  %4089 = vmatpush3.msra.mxu1 %v3060_v4 }
 0x2e8   :  { %3841 = vmatprep.subr.mxu0 %v2228_v17  ;;  %4090 = vmatprep.subr.mxu1 %v4128_v53 }
 0x2e9   :  { %3842 = vmatpush3.msra.mxu0 %v2212_v63  ;;  %4118 = vset.pattern.permute.xlu0 %v4130_v36 }
 0x2ea   :  { %3843 = vmatprep.subr.mxu0 %v2227_v19  ;;  %4091 = vmatpush3.msra.mxu1 %v3059_v34 }
 0x2eb   :  { %3844 = vmatpush3.msra.mxu0 %v2211_v14  ;;  %3066 = vperm.xlu0 %4118, %v3058_v35   ;;  %v3171_v14 = vld [vmem:[%s5698_s11 + $0x20] sm:$0x3] }
 0x2ec   :  { %3845 = vmatprep.subr.mxu0 %v2226_v26  ;;  %4119 = vset.pattern.permute.xlu1 %v4131_v9  ;;  %v3170_v26 = vld [vmem:[%s5698_s11 + $0x18] sm:$0xff] }
 0x2ed   :  { %3846 = vmatpush3.msra.mxu0 %v2210_v5  ;;  %4095 = vmatprep.subr.mxu1 %v4128_v53  ;;  %v3169_v5 = vld [vmem:[%s5698_s11 + $0x10] sm:$0xff] }
 0x2ee   :  { %3847 = vmatprep.subr.mxu0 %v2225_v22  ;;  %3149 = vperm.xlu1 %4119, %v3058_v35   ;;  %v3168_v22 = vld [vmem:[%s5698_s11 + $0x8] sm:$0xff] }
 0x2ef   :  { %3848 = vmatpush3.msra.mxu0 %v2209_v24  ;;  %4120 = vset.pattern.permute.xlu0 %v4131_v9  ;;  %v3167_v24 = vld [vmem:[%s5698_s11] sm:$0xff] }
 0x2f0   :  { %3849 = vmatprep.subr.mxu0 %v2224_v18  ;;  %v18_v18 = vstv %s5699_s12 }
 0x2f1   :  { %3850 = vmatpush3.msra.mxu0 %v2208_v28  ;;  %19 = vst [vmem:[#allocation5] sm:$0x1] %v18_v18  ;;  %v3412_v28 = vld [vmem:[%s5700_s9] ss:$0 sm:$0xff] }
 0x2f2   :  { %3851 = vmatprep.subr.mxu0 %v2223_v2 }
 0x2f3   :  { %3852 = vmatpush3.msra.mxu0 %v2207_v23  ;;  %v3414_v23 = vld [vmem:[%s5700_s9 + $0x1] ss:$0 sm:$0xff] }
 0x2f4   :  { %3853 = vmatprep.subr.mxu0 %v2222_v29 }
 0x2f5   :  { %3854 = vmatpush3.msra.mxu0 %v2206_v12 }
 0x2f6   :  { %3855 = vmatprep.subr.mxu0 %v2221_v1 }
 0x2f7   :  { %3856 = vmatpush3.msra.mxu0 %v2205_v30 }
 0x2f8   :  { %3857 = vmatprep.subr.mxu0 %v2220_v32  ;;  %v3415_v32 = vld [vmem:[%s5701_s10] ss:$0 sm:$0xff]  ;;  %v3416_v34 = vld [vmem:[#allocation5] ss:$0 sm:$0xff] }
 0x2f9   :  { %3858 = vmatpush3.msra.mxu0 %v2204_v7 }
 0x2fa   :  { %2982 = vmatmul.mubr.f32.vlgmr.msra.gmra.mxu0 %v5510_v62 }
 0x334   :  { %v3579_v41 = vpop.f32.mrf.mxu0 }
 0x336   :  { %v3614_v6 = vpop.f32.mrf.mxu1  ;;  %v3580_v44 = vpop.f32.mrf.mxu0 }
 0x337   :  { %v3581_v13 = vadd.f32 %v3580_v44, %v3579_v41 }
 0x338   :  { %v3615_v37 = vpop.f32.mrf.mxu1 }
 0x339   :  { %v2424_v21 = vadd.f32 %v3581_v13, %v3409_v47  ;;  %v3616_v62 = vadd.f32 %v3615_v37, %v3614_v6 }
 0x33b   :  { %v2494_v3 = vadd.f32 %v3616_v62, %v2424_v21 }
 0x355   :  { %v3649_v39 = vpop.f32.mrf.mxu0 }
 0x357   :  { %v3650_v8 = vpop.f32.mrf.mxu0 }
 0x358   :  { %v3684_v16 = vpop.f32.mrf.mxu1  ;;  %v3651_v31 = vadd.f32 %v3650_v8, %v3649_v39 }
 0x35a   :  { %v3685_v38 = vpop.f32.mrf.mxu1  ;;  %v2564_v52 = vadd.f32 %v3651_v31, %v2494_v3 }
 0x35b   :  { %v3686_v15 = vadd.f32 %v3685_v38, %v3684_v16 }
 0x35d   :  { %v2634_v46 = vadd.f32 %v3686_v15, %v2564_v52 }
 0x366   :  { %v3067_v2 = vpop.permute.xlu0 %3066 }
 0x367   :  { %v3073_v12 = vmul.f32 %v3412_v28, %v3067_v2 }
 0x369   :  { %v3150_v29 = vpop.permute.xlu1 %3149 }
 0x36a   :  { %v3156_v1 = vmul.f32 %v3414_v23, %v3150_v29 }
 0x377   :  { %v3719_v48 = vpop.f32.mrf.mxu0 }
 0x379   :  { %v3720_v49 = vpop.f32.mrf.mxu0 }
 0x37a   :  { %v3754_v20 = vpop.f32.mrf.mxu1  ;;  %v3721_v54 = vadd.f32 %v3720_v49, %v3719_v48 }
 0x37c   :  { %v3755_v40 = vpop.f32.mrf.mxu1  ;;  %v2704_v57 = vadd.f32 %v3721_v54, %v2634_v46 }
 0x37d   :  { %v3756_v50 = vadd.f32 %v3755_v40, %v3754_v20 }
 0x37f   :  { %v2774_v51 = vadd.f32 %v3756_v50, %v2704_v57 }
 0x399   :  { %v3789_v11 = vpop.f32.mrf.mxu0 }
 0x39b   :  { %v3790_v56 = vpop.f32.mrf.mxu0 }
 0x39c   :  { %v3824_v42 = vpop.f32.mrf.mxu1  ;;  %v3791_v58 = vadd.f32 %v3790_v56, %v3789_v11 }
 0x39e   :  { %v3825_v43 = vpop.f32.mrf.mxu1  ;;  %v2844_v59 = vadd.f32 %v3791_v58, %v2774_v51 }
 0x39f   :  { %v3826_v60 = vadd.f32 %v3825_v43, %v3824_v42 }
 0x3a0   :  { %v3053_v45 = vpop.f32.mrf.mxu1 }
 0x3a1   :  { %v2914_v25 = vadd.f32 %v3826_v60, %v2844_v59 }
 0x3a2   :  { %v4083_v10 = vpop.f32.mrf.mxu1 }
 0x3ba   :  { %v3859_v61 = vpop.f32.mrf.mxu0 }
 0x3bc   :  { %v3860_v55 = vpop.f32.mrf.mxu0 }
 0x3bd   :  { %v3861_v0 = vadd.f32 %v3860_v55, %v3859_v61 }
 0x3bf   :  { %v2984_v17 = vadd.f32 %v3861_v0, %v2914_v25 }
 0x3c1   :  { %v3054_v63 = vadd.f32 %v3053_v45, %v2984_v17 }
 0x3c3   :  { %v3057_v19 = vmax.f32 %v3054_v63, 0.0 }
 0x3c5   :  { %4093 = vmatmul.mubr.msk.f32.vlgmr.msra.gmra.mxu1 %vm884_vm2, %v3057_v19 }
 0x3c6   :  { %4105 = vmatprep.mubr.msk.f32.mxu1 %vm4129_vm10, %v4128_v53  ;;  %4096 = vmatpush3.msk.msra.mxu1 %vm3183_vm11, %v3171_v14 }
 0x3c7   :  { %4097 = vmatprep.subr.mxu1 %v4128_v53 }
 0x3c8   :  { %4098 = vmatpush3.msra.mxu1 %v3170_v26 }
 0x3c9   :  { %4099 = vmatprep.subr.mxu1 %v4128_v53 }
 0x3ca   :  { %4100 = vmatpush3.msra.mxu1 %v3169_v5 }
 0x3cb   :  { %4101 = vmatprep.subr.mxu1 %v4128_v53 }
 0x3cc   :  { %4102 = vmatpush3.msra.mxu1 %v3168_v22 }
 0x3cd   :  { %4103 = vmatprep.subr.mxu1 %v4128_v53 }
 0x3ce   :  { %4104 = vmatpush3.msra.mxu1 %v3167_v24 }
 0x485   :  { %v3143_v30 = vpop.f32.mrf.mxu1 }
 0x486   :  { %v3144_v53 = vadd.f32 %v3143_v30, %v3073_v12 }
 0x487   :  { %v4094_v7 = vpop.f32.mrf.mxu1 }
 0x488   :  { %v3157_v33 = vadd.f32 %v3156_v1, %v3144_v53 }
 0x48a   :  { %v3165_v27 = vadd.f32 %v3415_v32, %v3157_v33 }
 0x48c   :  { %v3166_v4 = vmax.f32 %v3165_v27, 0.0 }
 0x48e   :  { %4106 = vmatmul.mubr.msk.f32.vlgmr.msra.gmra.mxu1 %vm3179_vm12, %v3166_v4 }
 0x54e   :  { %v3253_v35 = vpop.f32.mrf.mxu1 }
 0x54f   :  { %v3254_v36 = vadd.f32 %v3416_v34, %v3253_v35 }
 0x550   :  { %v4107_v9 = vpop.f32.mrf.mxu1 }
 0x551   :  { %3258 = vst.msk [vmem:[%s5702_s13] sm:$0x3] %vm3257_vm13, %v3254_v36 }

</bundles_post_ra>
